<compile_context>
chip_gen: v5e
topology: v5e:2x2
jax: 0.10.0
libtpu: 0.0.40
codegen_flags: <defaults>
</compile_context>

<pallas_src>
import functools

import jax
import jax.numpy as jnp
from jax import lax
from jax.experimental import pallas as pl
from jax.experimental.pallas import tpu as pltpu


def _fam_kernel(low_hw_ref, low_hcw_ref, high_hcw_ref, w_ref, out_ref, pad_ref,
                *, C, H_low, W_low, H_high, W_high, lane_pad):
    f32 = jnp.float32
    bf16 = jnp.bfloat16
    HW = H_low * W_low
    PAD = lane_pad

    # ---- per-output-pixel coordinates, shared by conv masks and samplers -----
    p = lax.broadcasted_iota(jnp.int32, (1, HW), 1).astype(f32)
    y_out = jnp.floor(p / W_low)
    x_out = p - y_out * W_low

    inv_wm1 = 1.0 / float(max(W_low - 1, 1))
    inv_hm1 = 1.0 / float(max(H_low - 1, 1))
    base_gx = 2.0 * x_out * inv_wm1 - 1.0
    base_gy = 2.0 * y_out * inv_hm1 - 1.0

    def tap_weights(pos, n_src):
        """(n_src, HW) two-tap bilinear weight matrix; out-of-bounds taps get
        weight 0 (grid_sample padding_mode='zeros')."""
        p0 = jnp.floor(pos)
        w1 = pos - p0
        w0 = 1.0 - w1
        p0i = p0.astype(jnp.int32)
        p1i = p0i + 1
        v0 = (p0i >= 0) & (p0i <= n_src - 1)
        v1 = (p1i >= 0) & (p1i <= n_src - 1)
        w0 = jnp.where(v0, w0, 0.0)
        w1 = jnp.where(v1, w1, 0.0)
        rows = lax.broadcasted_iota(jnp.int32, (n_src, HW), 0)
        return (rows == p0i).astype(f32) * w0 + (rows == p1i).astype(f32) * w1

    def sample(feat_hcw, H_in, W_in, flow_x, flow_y, cast_bf16):
        """Separable bilinear grid-sample of an h-major feature (rows h*C + c)
        at the flow-displaced align_corners grid.  Returns (C, HW)."""
        gx = base_gx + flow_x * (1.0 / W_low)
        gy = base_gy + flow_y * (1.0 / H_low)
        px = (gx + 1.0) * (0.5 * (W_in - 1))
        py = (gy + 1.0) * (0.5 * (H_in - 1))
        sx = tap_weights(px, W_in)                                  # (W_in, HW)
        sy = tap_weights(py, H_in)                                  # (H_in, HW)
        if cast_bf16:
            a = jnp.dot(feat_hcw.astype(bf16), sx.astype(bf16),
                        preferred_element_type=f32)                 # (H_in*C, HW)
        else:
            a = jnp.dot(feat_hcw, sx, preferred_element_type=f32)
        out = jnp.zeros((C, HW), f32)
        for h in range(H_in):                       # y taps: multiply + reduce
            out = out + a[h * C:(h + 1) * C, :] * sy[h:h + 1, :]
        return out

    low_hw = low_hw_ref[0]                                          # (C, HW)
    low_hcw = low_hcw_ref[0]                                        # (H_low*C, W_low)
    high_hcw = high_hcw_ref[0]                                      # (H_high*C, W_high)

    # ---- bilinear upsample (align_corners=True) == zero-flow sample ----------
    high_up = sample(high_hcw, H_high, W_high, 0.0, 0.0, cast_bf16=False)

    # ---- joined feature cat([high_up, low]) in a lane-padded scratch ---------
    # Pad columns are never zeroed: every shifted lane that reads them is
    # discarded by the jnp.where masks below (select removes even NaN garbage).
    pad_ref[0:C, PAD:PAD + HW] = high_up
    pad_ref[C:2 * C, PAD:PAD + HW] = low_hw

    # boundary masks, separable in dy / dx, each (1, HW)
    xm = {dx: ((x_out + dx >= 0.0) & (x_out + dx <= W_low - 1.0))
          for dx in (-1, 0, 1)}
    ym = {dy: ((y_out + dy >= 0.0) & (y_out + dy <= H_low - 1.0))
          for dy in (-1, 0, 1)}

    # ---- fused 3x3 conv (folded flow_make || flow_gate): 9 per-tap matmuls ---
    conv = jnp.zeros((5, HW), f32)
    for ky in range(3):
        for kx in range(3):
            dy, dx = ky - 1, kx - 1
            off = dy * W_low + dx
            shifted = pad_ref[:, PAD + off:PAD + off + HW]          # (2C, HW)
            contrib = jnp.dot(w_ref[ky * 3 + kx], shifted,
                              preferred_element_type=f32)           # (5, HW)
            conv = conv + jnp.where(ym[dy] & xm[dx], contrib, 0.0)

    flow_up_x = conv[0:1, :]
    flow_up_y = conv[1:2, :]
    flow_dn_x = conv[2:3, :]
    flow_dn_y = conv[3:4, :]
    gate = 1.0 / (1.0 + jnp.exp(-conv[4:5, :]))                     # exact sigmoid

    # ---- flow warps of the ORIGINAL (un-downsampled) features ----------------
    high_warp = sample(high_hcw, H_high, W_high, flow_up_x, flow_up_y,
                       cast_bf16=True)
    low_warp = sample(low_hcw, H_low, W_low, flow_dn_x, flow_dn_y,
                      cast_bf16=True)

    # ---- torch.lerp(high_warp, low_warp, gate) -------------------------------
    out_ref[0] = (high_warp + gate * (low_warp - high_warp)).astype(out_ref.dtype)


def _fold_weights(w_down_low, w_down_high, w_flow_make, w_flow_gate):
    """Fold the 1x1 down_low/down_high convs into the 3x3 flow_make||flow_gate
    weights (exact: the channel 1x1 commutes with the channelwise bilinear
    upsample).  Returns per-tap weights of shape (9, 5, 2*C_in)."""
    f32 = jnp.float32
    wl = w_down_low[:, :, 0, 0].astype(f32)                         # (C_out, C_in)
    wh = w_down_high[:, :, 0, 0].astype(f32)
    C_out, C_in = wl.shape
    w53 = jnp.concatenate([w_flow_make, w_flow_gate], axis=0).astype(f32)  # (5, 2C_out, 3, 3)
    w_hi = jnp.einsum('ocyx,ci->oiyx', w53[:, :C_out], wh)          # (5, C_in, 3, 3)
    w_lo = jnp.einsum('ocyx,ci->oiyx', w53[:, C_out:], wl)          # (5, C_in, 3, 3)
    w_folded = jnp.concatenate([w_hi, w_lo], axis=1)                # (5, 2*C_in, 3, 3)
    return jnp.transpose(w_folded, (2, 3, 0, 1)).reshape(9, 5, 2 * C_in)


def _vmem_limit_bytes(C, H_low, W_low, H_high, W_high, lane_pad):
    """Shape-derived scoped-VMEM limit (review: no hard-coded 32 MiB; stay
    under the v7x 64 MiB physical ceiling)."""
    def tiles(r, c):  # f32 bytes after (8, 128) padding
        return ((r + 7) // 8 * 8) * ((c + 127) // 128 * 128) * 4
    HW = H_low * W_low
    blocks = (tiles(C, HW) + tiles(H_low * C, W_low) + tiles(H_high * C, W_high)
              + 9 * tiles(5, 2 * C) + tiles(C, HW))                 # in + out blocks
    scratch = tiles(2 * C, HW + 2 * lane_pad)
    temps = (tiles(W_low, HW) + tiles(H_low, HW) + tiles(W_high, HW)
             + tiles(H_high, HW) + tiles(H_low * C, HW) + tiles(H_high * C, HW)
             + 6 * tiles(C, HW))
    total = 2 * blocks + scratch + temps                            # double-buffered blocks
    return int(min(64 * 2 ** 20, max(16 * 2 ** 20, 2 * total)))


def flow_alignment_module_v2(low_feature, high_feature,
                             w_down_low, w_down_high, w_flow_make, w_flow_gate):
    """low_feature/high_feature: NCHW; weights in PyTorch Conv2d layout (bias=False)."""
    N, C, H_low, W_low = low_feature.shape
    _, _, H_high, W_high = high_feature.shape
    HW = H_low * W_low
    f32 = jnp.float32

    # Layouts: (C, H*W) for the conv/gate path (lane-dense pixels) and
    # h-major (H*C, W) for the separable samplers (x contraction on lanes).
    low_hw = low_feature.reshape(N, C, HW).astype(f32)
    low_hcw = jnp.transpose(low_feature, (0, 2, 1, 3)).reshape(
        N, H_low * C, W_low).astype(f32)
    high_hcw = jnp.transpose(high_feature, (0, 2, 1, 3)).reshape(
        N, H_high * C, W_high).astype(f32)

    w_taps = _fold_weights(w_down_low, w_down_high, w_flow_make, w_flow_gate)

    lane_pad = ((W_low + 1 + 127) // 128) * 128

    kernel = functools.partial(_fam_kernel, C=C, H_low=H_low, W_low=W_low,
                               H_high=H_high, W_high=W_high, lane_pad=lane_pad)

    out_flat = pl.pallas_call(
        kernel,
        out_shape=jax.ShapeDtypeStruct((N, C, HW), low_feature.dtype),
        grid_spec=pltpu.PrefetchScalarGridSpec(
            num_scalar_prefetch=0,
            grid=(N,),
            in_specs=[
                pl.BlockSpec((1, C, HW), lambda n: (n, 0, 0)),
                pl.BlockSpec((1, H_low * C, W_low), lambda n: (n, 0, 0)),
                pl.BlockSpec((1, H_high * C, W_high), lambda n: (n, 0, 0)),
                pl.BlockSpec((9, 5, 2 * C), lambda n: (0, 0, 0)),
            ],
            out_specs=pl.BlockSpec((1, C, HW), lambda n: (n, 0, 0)),
            scratch_shapes=[
                pltpu.VMEM((2 * C, HW + 2 * lane_pad), f32),   # padded joined feature
            ],
        ),
        compiler_params=pltpu.CompilerParams(
            dimension_semantics=("parallel",),
            vmem_limit_bytes=_vmem_limit_bytes(C, H_low, W_low, H_high, W_high,
                                               lane_pad)),
    )(low_hw, low_hcw, high_hcw, w_taps)

    # (N, C, H*W) -> NCHW: pure reshape.
    return out_flat.reshape(N, C, H_low, W_low)


if __name__ == "__main__":
    key = jax.random.PRNGKey(0)
    N, C_in, C_out = 2, 4, 8
    H_low, W_low = 16, 16
    H_high, W_high = 8, 8

    k1, k2, k3, k4, k5, k6 = jax.random.split(key, 6)
    low_feature = jax.random.normal(k1, (N, C_in, H_low, W_low), jnp.float32)
    high_feature = jax.random.normal(k2, (N, C_in, H_high, W_high), jnp.float32)

    # Deterministic synthetic parameters (PyTorch Conv2d weight layouts, bias=False).
    w_down_high = 0.1 * jax.random.normal(k3, (C_out, C_in, 1, 1), jnp.float32)
    w_down_low = 0.1 * jax.random.normal(k4, (C_out, C_in, 1, 1), jnp.float32)
    w_flow_make = 0.1 * jax.random.normal(k5, (4, 2 * C_out, 3, 3), jnp.float32)
    w_flow_gate = 0.1 * jax.random.normal(k6, (1, 2 * C_out, 3, 3), jnp.float32)

    out = flow_alignment_module_v2(low_feature, high_feature,
                                   w_down_low, w_down_high,
                                   w_flow_make, w_flow_gate)
    jax.block_until_ready(out)
    assert out.shape == (N, C_in, H_low, W_low)
    print("KERNEL_OK")
</pallas_src>

<mosaic_0001>
module attributes {stable_mosaic.version = 11 : i64} {
  func.func @_fam_kernel(%arg0: i32, %arg1: memref<1x4x256xf32, #tpu.memory_space<vmem>>, %arg2: memref<1x64x16xf32, #tpu.memory_space<vmem>>, %arg3: memref<1x32x8xf32, #tpu.memory_space<vmem>>, %arg4: memref<9x5x8xf32, #tpu.memory_space<vmem>>, %arg5: memref<1x4x256xf32, #tpu.memory_space<vmem>>, %arg6: memref<8x512xf32, #tpu.memory_space<vmem>>) attributes {dimension_semantics = [#tpu.dimension_semantics<parallel>], iteration_bounds = array<i64: 2>, scalar_prefetch = 0 : i64, scratch_operands = 1 : i64, tpu.core_type = #tpu.core_type<tc>, window_params = [{transform_indices = @transform_0, window_bounds = array<i64: 1, 4, 256>}, {transform_indices = @transform_1, window_bounds = array<i64: 1, 64, 16>}, {transform_indices = @transform_2, window_bounds = array<i64: 1, 32, 8>}, {pipeline_mode = #tpu.pipeline_mode<synchronous>, transform_indices = @transform_3, window_bounds = array<i64: 9, 5, 8>}, {transform_indices = @transform_4, window_bounds = array<i64: 1, 4, 256>}]} {
    %0 = tpu.iota {dimensions = array<i32: 1>} : vector<1x256xi32>
    %1 = arith.sitofp %0 : vector<1x256xi32> to vector<1x256xf32>
    %cst = arith.constant 1.600000e+01 : f32
    %2 = vector.broadcast %cst : f32 to vector<1x256xf32>
    %3 = arith.divf %1, %2 : vector<1x256xf32>
    %4 = math.floor %3 : vector<1x256xf32>
    %cst_0 = arith.constant 1.600000e+01 : f32
    %5 = vector.broadcast %cst_0 : f32 to vector<1x256xf32>
    %6 = arith.mulf %4, %5 : vector<1x256xf32>
    %7 = arith.subf %1, %6 : vector<1x256xf32>
    %cst_1 = arith.constant 2.000000e+00 : f32
    %8 = vector.broadcast %cst_1 : f32 to vector<1x256xf32>
    %9 = arith.mulf %8, %7 : vector<1x256xf32>
    %cst_2 = arith.constant 0.0666666701 : f32
    %10 = vector.broadcast %cst_2 : f32 to vector<1x256xf32>
    %11 = arith.mulf %9, %10 : vector<1x256xf32>
    %cst_3 = arith.constant 1.000000e+00 : f32
    %12 = vector.broadcast %cst_3 : f32 to vector<1x256xf32>
    %13 = arith.subf %11, %12 : vector<1x256xf32>
    %cst_4 = arith.constant 2.000000e+00 : f32
    %14 = vector.broadcast %cst_4 : f32 to vector<1x256xf32>
    %15 = arith.mulf %14, %4 : vector<1x256xf32>
    %cst_5 = arith.constant 0.0666666701 : f32
    %16 = vector.broadcast %cst_5 : f32 to vector<1x256xf32>
    %17 = arith.mulf %15, %16 : vector<1x256xf32>
    %cst_6 = arith.constant 1.000000e+00 : f32
    %18 = vector.broadcast %cst_6 : f32 to vector<1x256xf32>
    %19 = arith.subf %17, %18 : vector<1x256xf32>
    %c0 = arith.constant 0 : index
    %c0_7 = arith.constant 0 : index
    %c0_8 = arith.constant 0 : index
    %20 = vector.load %arg1[%c0, %c0_7, %c0_8] : memref<1x4x256xf32, #tpu.memory_space<vmem>>, vector<1x4x256xf32>
    %21 = vector.shape_cast %20 : vector<1x4x256xf32> to vector<4x256xf32>
    %c0_9 = arith.constant 0 : index
    %c0_10 = arith.constant 0 : index
    %c0_11 = arith.constant 0 : index
    %22 = vector.load %arg2[%c0_9, %c0_10, %c0_11] : memref<1x64x16xf32, #tpu.memory_space<vmem>>, vector<1x64x16xf32>
    %23 = vector.shape_cast %22 : vector<1x64x16xf32> to vector<64x16xf32>
    %c0_12 = arith.constant 0 : index
    %c0_13 = arith.constant 0 : index
    %c0_14 = arith.constant 0 : index
    %24 = vector.load %arg3[%c0_12, %c0_13, %c0_14] : memref<1x32x8xf32, #tpu.memory_space<vmem>>, vector<1x32x8xf32>
    %25 = vector.shape_cast %24 : vector<1x32x8xf32> to vector<32x8xf32>
    %cst_15 = arith.constant 0.000000e+00 : f32
    %26 = vector.broadcast %cst_15 : f32 to vector<1x256xf32>
    %27 = arith.addf %13, %26 : vector<1x256xf32>
    %cst_16 = arith.constant 0.000000e+00 : f32
    %28 = vector.broadcast %cst_16 : f32 to vector<1x256xf32>
    %29 = arith.addf %19, %28 : vector<1x256xf32>
    %cst_17 = arith.constant 1.000000e+00 : f32
    %30 = vector.broadcast %cst_17 : f32 to vector<1x256xf32>
    %31 = arith.addf %27, %30 : vector<1x256xf32>
    %cst_18 = arith.constant 3.500000e+00 : f32
    %32 = vector.broadcast %cst_18 : f32 to vector<1x256xf32>
    %33 = arith.mulf %31, %32 : vector<1x256xf32>
    %cst_19 = arith.constant 1.000000e+00 : f32
    %34 = vector.broadcast %cst_19 : f32 to vector<1x256xf32>
    %35 = arith.addf %29, %34 : vector<1x256xf32>
    %cst_20 = arith.constant 3.500000e+00 : f32
    %36 = vector.broadcast %cst_20 : f32 to vector<1x256xf32>
    %37 = arith.mulf %35, %36 : vector<1x256xf32>
    %38 = math.floor %33 : vector<1x256xf32>
    %39 = arith.subf %33, %38 : vector<1x256xf32>
    %cst_21 = arith.constant 1.000000e+00 : f32
    %40 = vector.broadcast %cst_21 : f32 to vector<1x256xf32>
    %41 = arith.subf %40, %39 : vector<1x256xf32>
    %42 = arith.fptosi %38 : vector<1x256xf32> to vector<1x256xi32>
    %c1_i32 = arith.constant 1 : i32
    %43 = vector.broadcast %c1_i32 : i32 to vector<1x256xi32>
    %44 = arith.addi %42, %43 : vector<1x256xi32>
    %c0_i32 = arith.constant 0 : i32
    %45 = vector.broadcast %c0_i32 : i32 to vector<1x256xi32>
    %46 = arith.cmpi sge, %42, %45 : vector<1x256xi32>
    %c7_i32 = arith.constant 7 : i32
    %47 = vector.broadcast %c7_i32 : i32 to vector<1x256xi32>
    %48 = arith.cmpi sle, %42, %47 : vector<1x256xi32>
    %49 = arith.andi %46, %48 : vector<1x256xi1>
    %c0_i32_22 = arith.constant 0 : i32
    %50 = vector.broadcast %c0_i32_22 : i32 to vector<1x256xi32>
    %51 = arith.cmpi sge, %44, %50 : vector<1x256xi32>
    %c7_i32_23 = arith.constant 7 : i32
    %52 = vector.broadcast %c7_i32_23 : i32 to vector<1x256xi32>
    %53 = arith.cmpi sle, %44, %52 : vector<1x256xi32>
    %54 = arith.andi %51, %53 : vector<1x256xi1>
    %cst_24 = arith.constant 0.000000e+00 : f32
    %55 = vector.broadcast %cst_24 : f32 to vector<1x256xf32>
    %56 = arith.select %49, %41, %55 : vector<1x256xi1>, vector<1x256xf32>
    %cst_25 = arith.constant 0.000000e+00 : f32
    %57 = vector.broadcast %cst_25 : f32 to vector<1x256xf32>
    %58 = arith.select %54, %39, %57 : vector<1x256xi1>, vector<1x256xf32>
    %59 = tpu.iota {dimensions = array<i32: 0>} : vector<8x256xi32>
    %60 = vector.broadcast %42 : vector<1x256xi32> to vector<8x256xi32>
    %61 = arith.cmpi eq, %59, %60 : vector<8x256xi32>
    %62 = arith.extui %61 : vector<8x256xi1> to vector<8x256xi32>
    %63 = arith.sitofp %62 : vector<8x256xi32> to vector<8x256xf32>
    %64 = vector.broadcast %56 : vector<1x256xf32> to vector<8x256xf32>
    %65 = arith.mulf %63, %64 : vector<8x256xf32>
    %66 = vector.broadcast %44 : vector<1x256xi32> to vector<8x256xi32>
    %67 = arith.cmpi eq, %59, %66 : vector<8x256xi32>
    %68 = arith.extui %67 : vector<8x256xi1> to vector<8x256xi32>
    %69 = arith.sitofp %68 : vector<8x256xi32> to vector<8x256xf32>
    %70 = vector.broadcast %58 : vector<1x256xf32> to vector<8x256xf32>
    %71 = arith.mulf %69, %70 : vector<8x256xf32>
    %72 = arith.addf %65, %71 : vector<8x256xf32>
    %73 = math.floor %37 : vector<1x256xf32>
    %74 = arith.subf %37, %73 : vector<1x256xf32>
    %cst_26 = arith.constant 1.000000e+00 : f32
    %75 = vector.broadcast %cst_26 : f32 to vector<1x256xf32>
    %76 = arith.subf %75, %74 : vector<1x256xf32>
    %77 = arith.fptosi %73 : vector<1x256xf32> to vector<1x256xi32>
    %c1_i32_27 = arith.constant 1 : i32
    %78 = vector.broadcast %c1_i32_27 : i32 to vector<1x256xi32>
    %79 = arith.addi %77, %78 : vector<1x256xi32>
    %c0_i32_28 = arith.constant 0 : i32
    %80 = vector.broadcast %c0_i32_28 : i32 to vector<1x256xi32>
    %81 = arith.cmpi sge, %77, %80 : vector<1x256xi32>
    %c7_i32_29 = arith.constant 7 : i32
    %82 = vector.broadcast %c7_i32_29 : i32 to vector<1x256xi32>
    %83 = arith.cmpi sle, %77, %82 : vector<1x256xi32>
    %84 = arith.andi %81, %83 : vector<1x256xi1>
    %c0_i32_30 = arith.constant 0 : i32
    %85 = vector.broadcast %c0_i32_30 : i32 to vector<1x256xi32>
    %86 = arith.cmpi sge, %79, %85 : vector<1x256xi32>
    %c7_i32_31 = arith.constant 7 : i32
    %87 = vector.broadcast %c7_i32_31 : i32 to vector<1x256xi32>
    %88 = arith.cmpi sle, %79, %87 : vector<1x256xi32>
    %89 = arith.andi %86, %88 : vector<1x256xi1>
    %cst_32 = arith.constant 0.000000e+00 : f32
    %90 = vector.broadcast %cst_32 : f32 to vector<1x256xf32>
    %91 = arith.select %84, %76, %90 : vector<1x256xi1>, vector<1x256xf32>
    %cst_33 = arith.constant 0.000000e+00 : f32
    %92 = vector.broadcast %cst_33 : f32 to vector<1x256xf32>
    %93 = arith.select %89, %74, %92 : vector<1x256xi1>, vector<1x256xf32>
    %94 = tpu.iota {dimensions = array<i32: 0>} : vector<8x256xi32>
    %95 = vector.broadcast %77 : vector<1x256xi32> to vector<8x256xi32>
    %96 = arith.cmpi eq, %94, %95 : vector<8x256xi32>
    %97 = arith.extui %96 : vector<8x256xi1> to vector<8x256xi32>
    %98 = arith.sitofp %97 : vector<8x256xi32> to vector<8x256xf32>
    %99 = vector.broadcast %91 : vector<1x256xf32> to vector<8x256xf32>
    %100 = arith.mulf %98, %99 : vector<8x256xf32>
    %101 = vector.broadcast %79 : vector<1x256xi32> to vector<8x256xi32>
    %102 = arith.cmpi eq, %94, %101 : vector<8x256xi32>
    %103 = arith.extui %102 : vector<8x256xi1> to vector<8x256xi32>
    %104 = arith.sitofp %103 : vector<8x256xi32> to vector<8x256xf32>
    %105 = vector.broadcast %93 : vector<1x256xf32> to vector<8x256xf32>
    %106 = arith.mulf %104, %105 : vector<8x256xf32>
    %107 = arith.addf %100, %106 : vector<8x256xf32>
    %cst_34 = arith.constant dense<0.000000e+00> : vector<32x256xf32>
    %108 = tpu.matmul %25, %72, %cst_34 {dimension_numbers = #tpu.dot_dimension_numbers<[1], [0], [0], [1], [0, 0, 1, 1], [], []>} : vector<32x8xf32>, vector<8x256xf32>, vector<32x256xf32> -> vector<32x256xf32>
    %cst_35 = arith.constant 0.000000e+00 : f32
    %109 = vector.broadcast %cst_35 : f32 to vector<4x256xf32>
    %110 = vector.extract_strided_slice %108 {offsets = [0, 0], sizes = [4, 256], strides = [1, 1]} : vector<32x256xf32> to vector<4x256xf32>
    %111 = vector.extract_strided_slice %107 {offsets = [0, 0], sizes = [1, 256], strides = [1, 1]} : vector<8x256xf32> to vector<1x256xf32>
    %112 = vector.broadcast %111 : vector<1x256xf32> to vector<4x256xf32>
    %113 = arith.mulf %110, %112 : vector<4x256xf32>
    %114 = arith.addf %109, %113 : vector<4x256xf32>
    %115 = vector.extract_strided_slice %108 {offsets = [4, 0], sizes = [4, 256], strides = [1, 1]} : vector<32x256xf32> to vector<4x256xf32>
    %116 = vector.extract_strided_slice %107 {offsets = [1, 0], sizes = [1, 256], strides = [1, 1]} : vector<8x256xf32> to vector<1x256xf32>
    %117 = vector.broadcast %116 : vector<1x256xf32> to vector<4x256xf32>
    %118 = arith.mulf %115, %117 : vector<4x256xf32>
    %119 = arith.addf %114, %118 : vector<4x256xf32>
    %120 = vector.extract_strided_slice %108 {offsets = [8, 0], sizes = [4, 256], strides = [1, 1]} : vector<32x256xf32> to vector<4x256xf32>
    %121 = vector.extract_strided_slice %107 {offsets = [2, 0], sizes = [1, 256], strides = [1, 1]} : vector<8x256xf32> to vector<1x256xf32>
    %122 = vector.broadcast %121 : vector<1x256xf32> to vector<4x256xf32>
    %123 = arith.mulf %120, %122 : vector<4x256xf32>
    %124 = arith.addf %119, %123 : vector<4x256xf32>
    %125 = vector.extract_strided_slice %108 {offsets = [12, 0], sizes = [4, 256], strides = [1, 1]} : vector<32x256xf32> to vector<4x256xf32>
    %126 = vector.extract_strided_slice %107 {offsets = [3, 0], sizes = [1, 256], strides = [1, 1]} : vector<8x256xf32> to vector<1x256xf32>
    %127 = vector.broadcast %126 : vector<1x256xf32> to vector<4x256xf32>
    %128 = arith.mulf %125, %127 : vector<4x256xf32>
    %129 = arith.addf %124, %128 : vector<4x256xf32>
    %130 = vector.extract_strided_slice %108 {offsets = [16, 0], sizes = [4, 256], strides = [1, 1]} : vector<32x256xf32> to vector<4x256xf32>
    %131 = vector.extract_strided_slice %107 {offsets = [4, 0], sizes = [1, 256], strides = [1, 1]} : vector<8x256xf32> to vector<1x256xf32>
    %132 = vector.broadcast %131 : vector<1x256xf32> to vector<4x256xf32>
    %133 = arith.mulf %130, %132 : vector<4x256xf32>
    %134 = arith.addf %129, %133 : vector<4x256xf32>
    %135 = vector.extract_strided_slice %108 {offsets = [20, 0], sizes = [4, 256], strides = [1, 1]} : vector<32x256xf32> to vector<4x256xf32>
    %136 = vector.extract_strided_slice %107 {offsets = [5, 0], sizes = [1, 256], strides = [1, 1]} : vector<8x256xf32> to vector<1x256xf32>
    %137 = vector.broadcast %136 : vector<1x256xf32> to vector<4x256xf32>
    %138 = arith.mulf %135, %137 : vector<4x256xf32>
    %139 = arith.addf %134, %138 : vector<4x256xf32>
    %140 = vector.extract_strided_slice %108 {offsets = [24, 0], sizes = [4, 256], strides = [1, 1]} : vector<32x256xf32> to vector<4x256xf32>
    %141 = vector.extract_strided_slice %107 {offsets = [6, 0], sizes = [1, 256], strides = [1, 1]} : vector<8x256xf32> to vector<1x256xf32>
    %142 = vector.broadcast %141 : vector<1x256xf32> to vector<4x256xf32>
    %143 = arith.mulf %140, %142 : vector<4x256xf32>
    %144 = arith.addf %139, %143 : vector<4x256xf32>
    %145 = vector.extract_strided_slice %108 {offsets = [28, 0], sizes = [4, 256], strides = [1, 1]} : vector<32x256xf32> to vector<4x256xf32>
    %146 = vector.extract_strided_slice %107 {offsets = [7, 0], sizes = [1, 256], strides = [1, 1]} : vector<8x256xf32> to vector<1x256xf32>
    %147 = vector.broadcast %146 : vector<1x256xf32> to vector<4x256xf32>
    %148 = arith.mulf %145, %147 : vector<4x256xf32>
    %149 = arith.addf %144, %148 : vector<4x256xf32>
    %c0_36 = arith.constant 0 : index
    %c128 = arith.constant 128 : index
    %150 = vector.load %arg6[%c0_36, %c128] : memref<8x512xf32, #tpu.memory_space<vmem>>, vector<4x256xf32>
    tpu.vector_store %arg6[%c0_36, %c128], %149 {strides = array<i32>} : memref<8x512xf32, #tpu.memory_space<vmem>>, vector<4x256xf32>,
    %c4 = arith.constant 4 : index
    %c128_37 = arith.constant 128 : index
    %151 = vector.load %arg6[%c4, %c128_37] : memref<8x512xf32, #tpu.memory_space<vmem>>, vector<4x256xf32>
    tpu.vector_store %arg6[%c4, %c128_37], %21 {strides = array<i32>} : memref<8x512xf32, #tpu.memory_space<vmem>>, vector<4x256xf32>,
    %cst_38 = arith.constant -1.000000e+00 : f32
    %152 = vector.broadcast %cst_38 : f32 to vector<1x256xf32>
    %153 = arith.addf %7, %152 : vector<1x256xf32>
    %cst_39 = arith.constant 0.000000e+00 : f32
    %154 = vector.broadcast %cst_39 : f32 to vector<1x256xf32>
    %155 = arith.cmpf oge, %153, %154 : vector<1x256xf32>
    %cst_40 = arith.constant -1.000000e+00 : f32
    %156 = vector.broadcast %cst_40 : f32 to vector<1x256xf32>
    %157 = arith.addf %7, %156 : vector<1x256xf32>
    %cst_41 = arith.constant 1.500000e+01 : f32
    %158 = vector.broadcast %cst_41 : f32 to vector<1x256xf32>
    %159 = arith.cmpf ole, %157, %158 : vector<1x256xf32>
    %160 = arith.andi %155, %159 : vector<1x256xi1>
    %cst_42 = arith.constant 0.000000e+00 : f32
    %161 = vector.broadcast %cst_42 : f32 to vector<1x256xf32>
    %162 = arith.addf %7, %161 : vector<1x256xf32>
    %cst_43 = arith.constant 0.000000e+00 : f32
    %163 = vector.broadcast %cst_43 : f32 to vector<1x256xf32>
    %164 = arith.cmpf oge, %162, %163 : vector<1x256xf32>
    %cst_44 = arith.constant 0.000000e+00 : f32
    %165 = vector.broadcast %cst_44 : f32 to vector<1x256xf32>
    %166 = arith.addf %7, %165 : vector<1x256xf32>
    %cst_45 = arith.constant 1.500000e+01 : f32
    %167 = vector.broadcast %cst_45 : f32 to vector<1x256xf32>
    %168 = arith.cmpf ole, %166, %167 : vector<1x256xf32>
    %169 = arith.andi %164, %168 : vector<1x256xi1>
    %cst_46 = arith.constant 1.000000e+00 : f32
    %170 = vector.broadcast %cst_46 : f32 to vector<1x256xf32>
    %171 = arith.addf %7, %170 : vector<1x256xf32>
    %cst_47 = arith.constant 0.000000e+00 : f32
    %172 = vector.broadcast %cst_47 : f32 to vector<1x256xf32>
    %173 = arith.cmpf oge, %171, %172 : vector<1x256xf32>
    %cst_48 = arith.constant 1.000000e+00 : f32
    %174 = vector.broadcast %cst_48 : f32 to vector<1x256xf32>
    %175 = arith.addf %7, %174 : vector<1x256xf32>
    %cst_49 = arith.constant 1.500000e+01 : f32
    %176 = vector.broadcast %cst_49 : f32 to vector<1x256xf32>
    %177 = arith.cmpf ole, %175, %176 : vector<1x256xf32>
    %178 = arith.andi %173, %177 : vector<1x256xi1>
    %cst_50 = arith.constant -1.000000e+00 : f32
    %179 = vector.broadcast %cst_50 : f32 to vector<1x256xf32>
    %180 = arith.addf %4, %179 : vector<1x256xf32>
    %cst_51 = arith.constant 0.000000e+00 : f32
    %181 = vector.broadcast %cst_51 : f32 to vector<1x256xf32>
    %182 = arith.cmpf oge, %180, %181 : vector<1x256xf32>
    %cst_52 = arith.constant -1.000000e+00 : f32
    %183 = vector.broadcast %cst_52 : f32 to vector<1x256xf32>
    %184 = arith.addf %4, %183 : vector<1x256xf32>
    %cst_53 = arith.constant 1.500000e+01 : f32
    %185 = vector.broadcast %cst_53 : f32 to vector<1x256xf32>
    %186 = arith.cmpf ole, %184, %185 : vector<1x256xf32>
    %187 = arith.andi %182, %186 : vector<1x256xi1>
    %cst_54 = arith.constant 0.000000e+00 : f32
    %188 = vector.broadcast %cst_54 : f32 to vector<1x256xf32>
    %189 = arith.addf %4, %188 : vector<1x256xf32>
    %cst_55 = arith.constant 0.000000e+00 : f32
    %190 = vector.broadcast %cst_55 : f32 to vector<1x256xf32>
    %191 = arith.cmpf oge, %189, %190 : vector<1x256xf32>
    %cst_56 = arith.constant 0.000000e+00 : f32
    %192 = vector.broadcast %cst_56 : f32 to vector<1x256xf32>
    %193 = arith.addf %4, %192 : vector<1x256xf32>
    %cst_57 = arith.constant 1.500000e+01 : f32
    %194 = vector.broadcast %cst_57 : f32 to vector<1x256xf32>
    %195 = arith.cmpf ole, %193, %194 : vector<1x256xf32>
    %196 = arith.andi %191, %195 : vector<1x256xi1>
    %cst_58 = arith.constant 1.000000e+00 : f32
    %197 = vector.broadcast %cst_58 : f32 to vector<1x256xf32>
    %198 = arith.addf %4, %197 : vector<1x256xf32>
    %cst_59 = arith.constant 0.000000e+00 : f32
    %199 = vector.broadcast %cst_59 : f32 to vector<1x256xf32>
    %200 = arith.cmpf oge, %198, %199 : vector<1x256xf32>
    %cst_60 = arith.constant 1.000000e+00 : f32
    %201 = vector.broadcast %cst_60 : f32 to vector<1x256xf32>
    %202 = arith.addf %4, %201 : vector<1x256xf32>
    %cst_61 = arith.constant 1.500000e+01 : f32
    %203 = vector.broadcast %cst_61 : f32 to vector<1x256xf32>
    %204 = arith.cmpf ole, %202, %203 : vector<1x256xf32>
    %205 = arith.andi %200, %204 : vector<1x256xi1>
    %cst_62 = arith.constant 0.000000e+00 : f32
    %206 = vector.broadcast %cst_62 : f32 to vector<5x256xf32>
    %c0_63 = arith.constant 0 : index
    %c111 = arith.constant 111 : index
    %207 = vector.load %arg6[%c0_63, %c111] : memref<8x512xf32, #tpu.memory_space<vmem>>, vector<8x256xf32>
    %c0_64 = arith.constant 0 : index
    %c0_65 = arith.constant 0 : index
    %c0_66 = arith.constant 0 : index
    %208 = vector.load %arg4[%c0_64, %c0_65, %c0_66] : memref<9x5x8xf32, #tpu.memory_space<vmem>>, vector<1x5x8xf32>
    %209 = vector.shape_cast %208 : vector<1x5x8xf32> to vector<5x8xf32>
    %cst_67 = arith.constant dense<0.000000e+00> : vector<5x256xf32>
    %210 = tpu.matmul %209, %207, %cst_67 {dimension_numbers = #tpu.dot_dimension_numbers<[1], [0], [0], [1], [0, 0, 1, 1], [], []>} : vector<5x8xf32>, vector<8x256xf32>, vector<5x256xf32> -> vector<5x256xf32>
    %211 = arith.andi %187, %160 : vector<1x256xi1>
    %cst_68 = arith.constant 0.000000e+00 : f32
    %212 = vector.shape_cast %211 : vector<1x256xi1> to vector<1x256xi1>
    %213 = vector.broadcast %212 : vector<1x256xi1> to vector<5x256xi1>
    %214 = vector.broadcast %cst_68 : f32 to vector<5x256xf32>
    %215 = arith.select %213, %210, %214 : vector<5x256xi1>, vector<5x256xf32>
    %216 = arith.addf %206, %215 : vector<5x256xf32>
    %c0_69 = arith.constant 0 : index
    %c112 = arith.constant 112 : index
    %217 = vector.load %arg6[%c0_69, %c112] : memref<8x512xf32, #tpu.memory_space<vmem>>, vector<8x256xf32>
    %c1 = arith.constant 1 : index
    %c0_70 = arith.constant 0 : index
    %c0_71 = arith.constant 0 : index
    %218 = vector.load %arg4[%c1, %c0_70, %c0_71] : memref<9x5x8xf32, #tpu.memory_space<vmem>>, vector<1x5x8xf32>
    %219 = vector.shape_cast %218 : vector<1x5x8xf32> to vector<5x8xf32>
    %cst_72 = arith.constant dense<0.000000e+00> : vector<5x256xf32>
    %220 = tpu.matmul %219, %217, %cst_72 {dimension_numbers = #tpu.dot_dimension_numbers<[1], [0], [0], [1], [0, 0, 1, 1], [], []>} : vector<5x8xf32>, vector<8x256xf32>, vector<5x256xf32> -> vector<5x256xf32>
    %221 = arith.andi %187, %169 : vector<1x256xi1>
    %cst_73 = arith.constant 0.000000e+00 : f32
    %222 = vector.shape_cast %221 : vector<1x256xi1> to vector<1x256xi1>
    %223 = vector.broadcast %222 : vector<1x256xi1> to vector<5x256xi1>
    %224 = vector.broadcast %cst_73 : f32 to vector<5x256xf32>
    %225 = arith.select %223, %220, %224 : vector<5x256xi1>, vector<5x256xf32>
    %226 = arith.addf %216, %225 : vector<5x256xf32>
    %c0_74 = arith.constant 0 : index
    %c113 = arith.constant 113 : index
    %227 = vector.load %arg6[%c0_74, %c113] : memref<8x512xf32, #tpu.memory_space<vmem>>, vector<8x256xf32>
    %c2 = arith.constant 2 : index
    %c0_75 = arith.constant 0 : index
    %c0_76 = arith.constant 0 : index
    %228 = vector.load %arg4[%c2, %c0_75, %c0_76] : memref<9x5x8xf32, #tpu.memory_space<vmem>>, vector<1x5x8xf32>
    %229 = vector.shape_cast %228 : vector<1x5x8xf32> to vector<5x8xf32>
    %cst_77 = arith.constant dense<0.000000e+00> : vector<5x256xf32>
    %230 = tpu.matmul %229, %227, %cst_77 {dimension_numbers = #tpu.dot_dimension_numbers<[1], [0], [0], [1], [0, 0, 1, 1], [], []>} : vector<5x8xf32>, vector<8x256xf32>, vector<5x256xf32> -> vector<5x256xf32>
    %231 = arith.andi %187, %178 : vector<1x256xi1>
    %cst_78 = arith.constant 0.000000e+00 : f32
    %232 = vector.shape_cast %231 : vector<1x256xi1> to vector<1x256xi1>
    %233 = vector.broadcast %232 : vector<1x256xi1> to vector<5x256xi1>
    %234 = vector.broadcast %cst_78 : f32 to vector<5x256xf32>
    %235 = arith.select %233, %230, %234 : vector<5x256xi1>, vector<5x256xf32>
    %236 = arith.addf %226, %235 : vector<5x256xf32>
    %c0_79 = arith.constant 0 : index
    %c127 = arith.constant 127 : index
    %237 = vector.load %arg6[%c0_79, %c127] : memref<8x512xf32, #tpu.memory_space<vmem>>, vector<8x256xf32>
    %c3 = arith.constant 3 : index
    %c0_80 = arith.constant 0 : index
    %c0_81 = arith.constant 0 : index
    %238 = vector.load %arg4[%c3, %c0_80, %c0_81] : memref<9x5x8xf32, #tpu.memory_space<vmem>>, vector<1x5x8xf32>
    %239 = vector.shape_cast %238 : vector<1x5x8xf32> to vector<5x8xf32>
    %cst_82 = arith.constant dense<0.000000e+00> : vector<5x256xf32>
    %240 = tpu.matmul %239, %237, %cst_82 {dimension_numbers = #tpu.dot_dimension_numbers<[1], [0], [0], [1], [0, 0, 1, 1], [], []>} : vector<5x8xf32>, vector<8x256xf32>, vector<5x256xf32> -> vector<5x256xf32>
    %241 = arith.andi %196, %160 : vector<1x256xi1>
    %cst_83 = arith.constant 0.000000e+00 : f32
    %242 = vector.shape_cast %241 : vector<1x256xi1> to vector<1x256xi1>
    %243 = vector.broadcast %242 : vector<1x256xi1> to vector<5x256xi1>
    %244 = vector.broadcast %cst_83 : f32 to vector<5x256xf32>
    %245 = arith.select %243, %240, %244 : vector<5x256xi1>, vector<5x256xf32>
    %246 = arith.addf %236, %245 : vector<5x256xf32>
    %c0_84 = arith.constant 0 : index
    %c128_85 = arith.constant 128 : index
    %247 = vector.load %arg6[%c0_84, %c128_85] : memref<8x512xf32, #tpu.memory_space<vmem>>, vector<8x256xf32>
    %c4_86 = arith.constant 4 : index
    %c0_87 = arith.constant 0 : index
    %c0_88 = arith.constant 0 : index
    %248 = vector.load %arg4[%c4_86, %c0_87, %c0_88] : memref<9x5x8xf32, #tpu.memory_space<vmem>>, vector<1x5x8xf32>
    %249 = vector.shape_cast %248 : vector<1x5x8xf32> to vector<5x8xf32>
    %cst_89 = arith.constant dense<0.000000e+00> : vector<5x256xf32>
    %250 = tpu.matmul %249, %247, %cst_89 {dimension_numbers = #tpu.dot_dimension_numbers<[1], [0], [0], [1], [0, 0, 1, 1], [], []>} : vector<5x8xf32>, vector<8x256xf32>, vector<5x256xf32> -> vector<5x256xf32>
    %251 = arith.andi %196, %169 : vector<1x256xi1>
    %cst_90 = arith.constant 0.000000e+00 : f32
    %252 = vector.shape_cast %251 : vector<1x256xi1> to vector<1x256xi1>
    %253 = vector.broadcast %252 : vector<1x256xi1> to vector<5x256xi1>
    %254 = vector.broadcast %cst_90 : f32 to vector<5x256xf32>
    %255 = arith.select %253, %250, %254 : vector<5x256xi1>, vector<5x256xf32>
    %256 = arith.addf %246, %255 : vector<5x256xf32>
    %c0_91 = arith.constant 0 : index
    %c129 = arith.constant 129 : index
    %257 = vector.load %arg6[%c0_91, %c129] : memref<8x512xf32, #tpu.memory_space<vmem>>, vector<8x256xf32>
    %c5 = arith.constant 5 : index
    %c0_92 = arith.constant 0 : index
    %c0_93 = arith.constant 0 : index
    %258 = vector.load %arg4[%c5, %c0_92, %c0_93] : memref<9x5x8xf32, #tpu.memory_space<vmem>>, vector<1x5x8xf32>
    %259 = vector.shape_cast %258 : vector<1x5x8xf32> to vector<5x8xf32>
    %cst_94 = arith.constant dense<0.000000e+00> : vector<5x256xf32>
    %260 = tpu.matmul %259, %257, %cst_94 {dimension_numbers = #tpu.dot_dimension_numbers<[1], [0], [0], [1], [0, 0, 1, 1], [], []>} : vector<5x8xf32>, vector<8x256xf32>, vector<5x256xf32> -> vector<5x256xf32>
    %261 = arith.andi %196, %178 : vector<1x256xi1>
    %cst_95 = arith.constant 0.000000e+00 : f32
    %262 = vector.shape_cast %261 : vector<1x256xi1> to vector<1x256xi1>
    %263 = vector.broadcast %262 : vector<1x256xi1> to vector<5x256xi1>
    %264 = vector.broadcast %cst_95 : f32 to vector<5x256xf32>
    %265 = arith.select %263, %260, %264 : vector<5x256xi1>, vector<5x256xf32>
    %266 = arith.addf %256, %265 : vector<5x256xf32>
    %c0_96 = arith.constant 0 : index
    %c143 = arith.constant 143 : index
    %267 = vector.load %arg6[%c0_96, %c143] : memref<8x512xf32, #tpu.memory_space<vmem>>, vector<8x256xf32>
    %c6 = arith.constant 6 : index
    %c0_97 = arith.constant 0 : index
    %c0_98 = arith.constant 0 : index
    %268 = vector.load %arg4[%c6, %c0_97, %c0_98] : memref<9x5x8xf32, #tpu.memory_space<vmem>>, vector<1x5x8xf32>
    %269 = vector.shape_cast %268 : vector<1x5x8xf32> to vector<5x8xf32>
    %cst_99 = arith.constant dense<0.000000e+00> : vector<5x256xf32>
    %270 = tpu.matmul %269, %267, %cst_99 {dimension_numbers = #tpu.dot_dimension_numbers<[1], [0], [0], [1], [0, 0, 1, 1], [], []>} : vector<5x8xf32>, vector<8x256xf32>, vector<5x256xf32> -> vector<5x256xf32>
    %271 = arith.andi %205, %160 : vector<1x256xi1>
    %cst_100 = arith.constant 0.000000e+00 : f32
    %272 = vector.shape_cast %271 : vector<1x256xi1> to vector<1x256xi1>
    %273 = vector.broadcast %272 : vector<1x256xi1> to vector<5x256xi1>
    %274 = vector.broadcast %cst_100 : f32 to vector<5x256xf32>
    %275 = arith.select %273, %270, %274 : vector<5x256xi1>, vector<5x256xf32>
    %276 = arith.addf %266, %275 : vector<5x256xf32>
    %c0_101 = arith.constant 0 : index
    %c144 = arith.constant 144 : index
    %277 = vector.load %arg6[%c0_101, %c144] : memref<8x512xf32, #tpu.memory_space<vmem>>, vector<8x256xf32>
    %c7 = arith.constant 7 : index
    %c0_102 = arith.constant 0 : index
    %c0_103 = arith.constant 0 : index
    %278 = vector.load %arg4[%c7, %c0_102, %c0_103] : memref<9x5x8xf32, #tpu.memory_space<vmem>>, vector<1x5x8xf32>
    %279 = vector.shape_cast %278 : vector<1x5x8xf32> to vector<5x8xf32>
    %cst_104 = arith.constant dense<0.000000e+00> : vector<5x256xf32>
    %280 = tpu.matmul %279, %277, %cst_104 {dimension_numbers = #tpu.dot_dimension_numbers<[1], [0], [0], [1], [0, 0, 1, 1], [], []>} : vector<5x8xf32>, vector<8x256xf32>, vector<5x256xf32> -> vector<5x256xf32>
    %281 = arith.andi %205, %169 : vector<1x256xi1>
    %cst_105 = arith.constant 0.000000e+00 : f32
    %282 = vector.shape_cast %281 : vector<1x256xi1> to vector<1x256xi1>
    %283 = vector.broadcast %282 : vector<1x256xi1> to vector<5x256xi1>
    %284 = vector.broadcast %cst_105 : f32 to vector<5x256xf32>
    %285 = arith.select %283, %280, %284 : vector<5x256xi1>, vector<5x256xf32>
    %286 = arith.addf %276, %285 : vector<5x256xf32>
    %c0_106 = arith.constant 0 : index
    %c145 = arith.constant 145 : index
    %287 = vector.load %arg6[%c0_106, %c145] : memref<8x512xf32, #tpu.memory_space<vmem>>, vector<8x256xf32>
    %c8 = arith.constant 8 : index
    %c0_107 = arith.constant 0 : index
    %c0_108 = arith.constant 0 : index
    %288 = vector.load %arg4[%c8, %c0_107, %c0_108] : memref<9x5x8xf32, #tpu.memory_space<vmem>>, vector<1x5x8xf32>
    %289 = vector.shape_cast %288 : vector<1x5x8xf32> to vector<5x8xf32>
    %cst_109 = arith.constant dense<0.000000e+00> : vector<5x256xf32>
    %290 = tpu.matmul %289, %287, %cst_109 {dimension_numbers = #tpu.dot_dimension_numbers<[1], [0], [0], [1], [0, 0, 1, 1], [], []>} : vector<5x8xf32>, vector<8x256xf32>, vector<5x256xf32> -> vector<5x256xf32>
    %291 = arith.andi %205, %178 : vector<1x256xi1>
    %cst_110 = arith.constant 0.000000e+00 : f32
    %292 = vector.shape_cast %291 : vector<1x256xi1> to vector<1x256xi1>
    %293 = vector.broadcast %292 : vector<1x256xi1> to vector<5x256xi1>
    %294 = vector.broadcast %cst_110 : f32 to vector<5x256xf32>
    %295 = arith.select %293, %290, %294 : vector<5x256xi1>, vector<5x256xf32>
    %296 = arith.addf %286, %295 : vector<5x256xf32>
    %297 = vector.extract_strided_slice %296 {offsets = [0, 0], sizes = [1, 256], strides = [1, 1]} : vector<5x256xf32> to vector<1x256xf32>
    %298 = vector.extract_strided_slice %296 {offsets = [1, 0], sizes = [1, 256], strides = [1, 1]} : vector<5x256xf32> to vector<1x256xf32>
    %299 = vector.extract_strided_slice %296 {offsets = [2, 0], sizes = [1, 256], strides = [1, 1]} : vector<5x256xf32> to vector<1x256xf32>
    %300 = vector.extract_strided_slice %296 {offsets = [3, 0], sizes = [1, 256], strides = [1, 1]} : vector<5x256xf32> to vector<1x256xf32>
    %301 = vector.extract_strided_slice %296 {offsets = [4, 0], sizes = [1, 256], strides = [1, 1]} : vector<5x256xf32> to vector<1x256xf32>
    %cst_111 = arith.constant 0.000000e+00 : f32
    %302 = vector.broadcast %cst_111 : f32 to vector<1x256xf32>
    %303 = arith.subf %302, %301 : vector<1x256xf32>
    %304 = math.exp %303 : vector<1x256xf32>
    %cst_112 = arith.constant 1.000000e+00 : f32
    %305 = vector.broadcast %cst_112 : f32 to vector<1x256xf32>
    %306 = arith.addf %305, %304 : vector<1x256xf32>
    %cst_113 = arith.constant 1.000000e+00 : f32
    %307 = vector.broadcast %cst_113 : f32 to vector<1x256xf32>
    %308 = arith.divf %307, %306 : vector<1x256xf32>
    %cst_114 = arith.constant 6.250000e-02 : f32
    %309 = vector.broadcast %cst_114 : f32 to vector<1x256xf32>
    %310 = arith.mulf %297, %309 : vector<1x256xf32>
    %311 = arith.addf %13, %310 : vector<1x256xf32>
    %cst_115 = arith.constant 6.250000e-02 : f32
    %312 = vector.broadcast %cst_115 : f32 to vector<1x256xf32>
    %313 = arith.mulf %298, %312 : vector<1x256xf32>
    %314 = arith.addf %19, %313 : vector<1x256xf32>
    %cst_116 = arith.constant 1.000000e+00 : f32
    %315 = vector.broadcast %cst_116 : f32 to vector<1x256xf32>
    %316 = arith.addf %311, %315 : vector<1x256xf32>
    %cst_117 = arith.constant 3.500000e+00 : f32
    %317 = vector.broadcast %cst_117 : f32 to vector<1x256xf32>
    %318 = arith.mulf %316, %317 : vector<1x256xf32>
    %cst_118 = arith.constant 1.000000e+00 : f32
    %319 = vector.broadcast %cst_118 : f32 to vector<1x256xf32>
    %320 = arith.addf %314, %319 : vector<1x256xf32>
    %cst_119 = arith.constant 3.500000e+00 : f32
    %321 = vector.broadcast %cst_119 : f32 to vector<1x256xf32>
    %322 = arith.mulf %320, %321 : vector<1x256xf32>
    %323 = math.floor %318 : vector<1x256xf32>
    %324 = arith.subf %318, %323 : vector<1x256xf32>
    %cst_120 = arith.constant 1.000000e+00 : f32
    %325 = vector.broadcast %cst_120 : f32 to vector<1x256xf32>
    %326 = arith.subf %325, %324 : vector<1x256xf32>
    %327 = arith.fptosi %323 : vector<1x256xf32> to vector<1x256xi32>
    %c1_i32_121 = arith.constant 1 : i32
    %328 = vector.broadcast %c1_i32_121 : i32 to vector<1x256xi32>
    %329 = arith.addi %327, %328 : vector<1x256xi32>
    %c0_i32_122 = arith.constant 0 : i32
    %330 = vector.broadcast %c0_i32_122 : i32 to vector<1x256xi32>
    %331 = arith.cmpi sge, %327, %330 : vector<1x256xi32>
    %c7_i32_123 = arith.constant 7 : i32
    %332 = vector.broadcast %c7_i32_123 : i32 to vector<1x256xi32>
    %333 = arith.cmpi sle, %327, %332 : vector<1x256xi32>
    %334 = arith.andi %331, %333 : vector<1x256xi1>
    %c0_i32_124 = arith.constant 0 : i32
    %335 = vector.broadcast %c0_i32_124 : i32 to vector<1x256xi32>
    %336 = arith.cmpi sge, %329, %335 : vector<1x256xi32>
    %c7_i32_125 = arith.constant 7 : i32
    %337 = vector.broadcast %c7_i32_125 : i32 to vector<1x256xi32>
    %338 = arith.cmpi sle, %329, %337 : vector<1x256xi32>
    %339 = arith.andi %336, %338 : vector<1x256xi1>
    %cst_126 = arith.constant 0.000000e+00 : f32
    %340 = vector.broadcast %cst_126 : f32 to vector<1x256xf32>
    %341 = arith.select %334, %326, %340 : vector<1x256xi1>, vector<1x256xf32>
    %cst_127 = arith.constant 0.000000e+00 : f32
    %342 = vector.broadcast %cst_127 : f32 to vector<1x256xf32>
    %343 = arith.select %339, %324, %342 : vector<1x256xi1>, vector<1x256xf32>
    %344 = tpu.iota {dimensions = array<i32: 0>} : vector<8x256xi32>
    %345 = vector.broadcast %327 : vector<1x256xi32> to vector<8x256xi32>
    %346 = arith.cmpi eq, %344, %345 : vector<8x256xi32>
    %347 = arith.extui %346 : vector<8x256xi1> to vector<8x256xi32>
    %348 = arith.sitofp %347 : vector<8x256xi32> to vector<8x256xf32>
    %349 = vector.broadcast %341 : vector<1x256xf32> to vector<8x256xf32>
    %350 = arith.mulf %348, %349 : vector<8x256xf32>
    %351 = vector.broadcast %329 : vector<1x256xi32> to vector<8x256xi32>
    %352 = arith.cmpi eq, %344, %351 : vector<8x256xi32>
    %353 = arith.extui %352 : vector<8x256xi1> to vector<8x256xi32>
    %354 = arith.sitofp %353 : vector<8x256xi32> to vector<8x256xf32>
    %355 = vector.broadcast %343 : vector<1x256xf32> to vector<8x256xf32>
    %356 = arith.mulf %354, %355 : vector<8x256xf32>
    %357 = arith.addf %350, %356 : vector<8x256xf32>
    %358 = math.floor %322 : vector<1x256xf32>
    %359 = arith.subf %322, %358 : vector<1x256xf32>
    %cst_128 = arith.constant 1.000000e+00 : f32
    %360 = vector.broadcast %cst_128 : f32 to vector<1x256xf32>
    %361 = arith.subf %360, %359 : vector<1x256xf32>
    %362 = arith.fptosi %358 : vector<1x256xf32> to vector<1x256xi32>
    %c1_i32_129 = arith.constant 1 : i32
    %363 = vector.broadcast %c1_i32_129 : i32 to vector<1x256xi32>
    %364 = arith.addi %362, %363 : vector<1x256xi32>
    %c0_i32_130 = arith.constant 0 : i32
    %365 = vector.broadcast %c0_i32_130 : i32 to vector<1x256xi32>
    %366 = arith.cmpi sge, %362, %365 : vector<1x256xi32>
    %c7_i32_131 = arith.constant 7 : i32
    %367 = vector.broadcast %c7_i32_131 : i32 to vector<1x256xi32>
    %368 = arith.cmpi sle, %362, %367 : vector<1x256xi32>
    %369 = arith.andi %366, %368 : vector<1x256xi1>
    %c0_i32_132 = arith.constant 0 : i32
    %370 = vector.broadcast %c0_i32_132 : i32 to vector<1x256xi32>
    %371 = arith.cmpi sge, %364, %370 : vector<1x256xi32>
    %c7_i32_133 = arith.constant 7 : i32
    %372 = vector.broadcast %c7_i32_133 : i32 to vector<1x256xi32>
    %373 = arith.cmpi sle, %364, %372 : vector<1x256xi32>
    %374 = arith.andi %371, %373 : vector<1x256xi1>
    %cst_134 = arith.constant 0.000000e+00 : f32
    %375 = vector.broadcast %cst_134 : f32 to vector<1x256xf32>
    %376 = arith.select %369, %361, %375 : vector<1x256xi1>, vector<1x256xf32>
    %cst_135 = arith.constant 0.000000e+00 : f32
    %377 = vector.broadcast %cst_135 : f32 to vector<1x256xf32>
    %378 = arith.select %374, %359, %377 : vector<1x256xi1>, vector<1x256xf32>
    %379 = tpu.iota {dimensions = array<i32: 0>} : vector<8x256xi32>
    %380 = vector.broadcast %362 : vector<1x256xi32> to vector<8x256xi32>
    %381 = arith.cmpi eq, %379, %380 : vector<8x256xi32>
    %382 = arith.extui %381 : vector<8x256xi1> to vector<8x256xi32>
    %383 = arith.sitofp %382 : vector<8x256xi32> to vector<8x256xf32>
    %384 = vector.broadcast %376 : vector<1x256xf32> to vector<8x256xf32>
    %385 = arith.mulf %383, %384 : vector<8x256xf32>
    %386 = vector.broadcast %364 : vector<1x256xi32> to vector<8x256xi32>
    %387 = arith.cmpi eq, %379, %386 : vector<8x256xi32>
    %388 = arith.extui %387 : vector<8x256xi1> to vector<8x256xi32>
    %389 = arith.sitofp %388 : vector<8x256xi32> to vector<8x256xf32>
    %390 = vector.broadcast %378 : vector<1x256xf32> to vector<8x256xf32>
    %391 = arith.mulf %389, %390 : vector<8x256xf32>
    %392 = arith.addf %385, %391 : vector<8x256xf32>
    %393 = arith.truncf %25 : vector<32x8xf32> to vector<32x8xbf16>
    %394 = arith.truncf %357 : vector<8x256xf32> to vector<8x256xbf16>
    %cst_136 = arith.constant dense<0.000000e+00> : vector<32x256xf32>
    %395 = tpu.matmul %393, %394, %cst_136 {dimension_numbers = #tpu.dot_dimension_numbers<[1], [0], [0], [1], [0, 0, 1, 1], [], []>} : vector<32x8xbf16>, vector<8x256xbf16>, vector<32x256xf32> -> vector<32x256xf32>
    %cst_137 = arith.constant 0.000000e+00 : f32
    %396 = vector.broadcast %cst_137 : f32 to vector<4x256xf32>
    %397 = vector.extract_strided_slice %395 {offsets = [0, 0], sizes = [4, 256], strides = [1, 1]} : vector<32x256xf32> to vector<4x256xf32>
    %398 = vector.extract_strided_slice %392 {offsets = [0, 0], sizes = [1, 256], strides = [1, 1]} : vector<8x256xf32> to vector<1x256xf32>
    %399 = vector.broadcast %398 : vector<1x256xf32> to vector<4x256xf32>
    %400 = arith.mulf %397, %399 : vector<4x256xf32>
    %401 = arith.addf %396, %400 : vector<4x256xf32>
    %402 = vector.extract_strided_slice %395 {offsets = [4, 0], sizes = [4, 256], strides = [1, 1]} : vector<32x256xf32> to vector<4x256xf32>
    %403 = vector.extract_strided_slice %392 {offsets = [1, 0], sizes = [1, 256], strides = [1, 1]} : vector<8x256xf32> to vector<1x256xf32>
    %404 = vector.broadcast %403 : vector<1x256xf32> to vector<4x256xf32>
    %405 = arith.mulf %402, %404 : vector<4x256xf32>
    %406 = arith.addf %401, %405 : vector<4x256xf32>
    %407 = vector.extract_strided_slice %395 {offsets = [8, 0], sizes = [4, 256], strides = [1, 1]} : vector<32x256xf32> to vector<4x256xf32>
    %408 = vector.extract_strided_slice %392 {offsets = [2, 0], sizes = [1, 256], strides = [1, 1]} : vector<8x256xf32> to vector<1x256xf32>
    %409 = vector.broadcast %408 : vector<1x256xf32> to vector<4x256xf32>
    %410 = arith.mulf %407, %409 : vector<4x256xf32>
    %411 = arith.addf %406, %410 : vector<4x256xf32>
    %412 = vector.extract_strided_slice %395 {offsets = [12, 0], sizes = [4, 256], strides = [1, 1]} : vector<32x256xf32> to vector<4x256xf32>
    %413 = vector.extract_strided_slice %392 {offsets = [3, 0], sizes = [1, 256], strides = [1, 1]} : vector<8x256xf32> to vector<1x256xf32>
    %414 = vector.broadcast %413 : vector<1x256xf32> to vector<4x256xf32>
    %415 = arith.mulf %412, %414 : vector<4x256xf32>
    %416 = arith.addf %411, %415 : vector<4x256xf32>
    %417 = vector.extract_strided_slice %395 {offsets = [16, 0], sizes = [4, 256], strides = [1, 1]} : vector<32x256xf32> to vector<4x256xf32>
    %418 = vector.extract_strided_slice %392 {offsets = [4, 0], sizes = [1, 256], strides = [1, 1]} : vector<8x256xf32> to vector<1x256xf32>
    %419 = vector.broadcast %418 : vector<1x256xf32> to vector<4x256xf32>
    %420 = arith.mulf %417, %419 : vector<4x256xf32>
    %421 = arith.addf %416, %420 : vector<4x256xf32>
    %422 = vector.extract_strided_slice %395 {offsets = [20, 0], sizes = [4, 256], strides = [1, 1]} : vector<32x256xf32> to vector<4x256xf32>
    %423 = vector.extract_strided_slice %392 {offsets = [5, 0], sizes = [1, 256], strides = [1, 1]} : vector<8x256xf32> to vector<1x256xf32>
    %424 = vector.broadcast %423 : vector<1x256xf32> to vector<4x256xf32>
    %425 = arith.mulf %422, %424 : vector<4x256xf32>
    %426 = arith.addf %421, %425 : vector<4x256xf32>
    %427 = vector.extract_strided_slice %395 {offsets = [24, 0], sizes = [4, 256], strides = [1, 1]} : vector<32x256xf32> to vector<4x256xf32>
    %428 = vector.extract_strided_slice %392 {offsets = [6, 0], sizes = [1, 256], strides = [1, 1]} : vector<8x256xf32> to vector<1x256xf32>
    %429 = vector.broadcast %428 : vector<1x256xf32> to vector<4x256xf32>
    %430 = arith.mulf %427, %429 : vector<4x256xf32>
    %431 = arith.addf %426, %430 : vector<4x256xf32>
    %432 = vector.extract_strided_slice %395 {offsets = [28, 0], sizes = [4, 256], strides = [1, 1]} : vector<32x256xf32> to vector<4x256xf32>
    %433 = vector.extract_strided_slice %392 {offsets = [7, 0], sizes = [1, 256], strides = [1, 1]} : vector<8x256xf32> to vector<1x256xf32>
    %434 = vector.broadcast %433 : vector<1x256xf32> to vector<4x256xf32>
    %435 = arith.mulf %432, %434 : vector<4x256xf32>
    %436 = arith.addf %431, %435 : vector<4x256xf32>
    %cst_138 = arith.constant 6.250000e-02 : f32
    %437 = vector.broadcast %cst_138 : f32 to vector<1x256xf32>
    %438 = arith.mulf %299, %437 : vector<1x256xf32>
    %439 = arith.addf %13, %438 : vector<1x256xf32>
    %cst_139 = arith.constant 6.250000e-02 : f32
    %440 = vector.broadcast %cst_139 : f32 to vector<1x256xf32>
    %441 = arith.mulf %300, %440 : vector<1x256xf32>
    %442 = arith.addf %19, %441 : vector<1x256xf32>
    %cst_140 = arith.constant 1.000000e+00 : f32
    %443 = vector.broadcast %cst_140 : f32 to vector<1x256xf32>
    %444 = arith.addf %439, %443 : vector<1x256xf32>
    %cst_141 = arith.constant 7.500000e+00 : f32
    %445 = vector.broadcast %cst_141 : f32 to vector<1x256xf32>
    %446 = arith.mulf %444, %445 : vector<1x256xf32>
    %cst_142 = arith.constant 1.000000e+00 : f32
    %447 = vector.broadcast %cst_142 : f32 to vector<1x256xf32>
    %448 = arith.addf %442, %447 : vector<1x256xf32>
    %cst_143 = arith.constant 7.500000e+00 : f32
    %449 = vector.broadcast %cst_143 : f32 to vector<1x256xf32>
    %450 = arith.mulf %448, %449 : vector<1x256xf32>
    %451 = math.floor %446 : vector<1x256xf32>
    %452 = arith.subf %446, %451 : vector<1x256xf32>
    %cst_144 = arith.constant 1.000000e+00 : f32
    %453 = vector.broadcast %cst_144 : f32 to vector<1x256xf32>
    %454 = arith.subf %453, %452 : vector<1x256xf32>
    %455 = arith.fptosi %451 : vector<1x256xf32> to vector<1x256xi32>
    %c1_i32_145 = arith.constant 1 : i32
    %456 = vector.broadcast %c1_i32_145 : i32 to vector<1x256xi32>
    %457 = arith.addi %455, %456 : vector<1x256xi32>
    %c0_i32_146 = arith.constant 0 : i32
    %458 = vector.broadcast %c0_i32_146 : i32 to vector<1x256xi32>
    %459 = arith.cmpi sge, %455, %458 : vector<1x256xi32>
    %c15_i32 = arith.constant 15 : i32
    %460 = vector.broadcast %c15_i32 : i32 to vector<1x256xi32>
    %461 = arith.cmpi sle, %455, %460 : vector<1x256xi32>
    %462 = arith.andi %459, %461 : vector<1x256xi1>
    %c0_i32_147 = arith.constant 0 : i32
    %463 = vector.broadcast %c0_i32_147 : i32 to vector<1x256xi32>
    %464 = arith.cmpi sge, %457, %463 : vector<1x256xi32>
    %c15_i32_148 = arith.constant 15 : i32
    %465 = vector.broadcast %c15_i32_148 : i32 to vector<1x256xi32>
    %466 = arith.cmpi sle, %457, %465 : vector<1x256xi32>
    %467 = arith.andi %464, %466 : vector<1x256xi1>
    %cst_149 = arith.constant 0.000000e+00 : f32
    %468 = vector.broadcast %cst_149 : f32 to vector<1x256xf32>
    %469 = arith.select %462, %454, %468 : vector<1x256xi1>, vector<1x256xf32>
    %cst_150 = arith.constant 0.000000e+00 : f32
    %470 = vector.broadcast %cst_150 : f32 to vector<1x256xf32>
    %471 = arith.select %467, %452, %470 : vector<1x256xi1>, vector<1x256xf32>
    %472 = tpu.iota {dimensions = array<i32: 0>} : vector<16x256xi32>
    %473 = vector.broadcast %455 : vector<1x256xi32> to vector<16x256xi32>
    %474 = arith.cmpi eq, %472, %473 : vector<16x256xi32>
    %475 = arith.extui %474 : vector<16x256xi1> to vector<16x256xi32>
    %476 = arith.sitofp %475 : vector<16x256xi32> to vector<16x256xf32>
    %477 = vector.broadcast %469 : vector<1x256xf32> to vector<16x256xf32>
    %478 = arith.mulf %476, %477 : vector<16x256xf32>
    %479 = vector.broadcast %457 : vector<1x256xi32> to vector<16x256xi32>
    %480 = arith.cmpi eq, %472, %479 : vector<16x256xi32>
    %481 = arith.extui %480 : vector<16x256xi1> to vector<16x256xi32>
    %482 = arith.sitofp %481 : vector<16x256xi32> to vector<16x256xf32>
    %483 = vector.broadcast %471 : vector<1x256xf32> to vector<16x256xf32>
    %484 = arith.mulf %482, %483 : vector<16x256xf32>
    %485 = arith.addf %478, %484 : vector<16x256xf32>
    %486 = math.floor %450 : vector<1x256xf32>
    %487 = arith.subf %450, %486 : vector<1x256xf32>
    %cst_151 = arith.constant 1.000000e+00 : f32
    %488 = vector.broadcast %cst_151 : f32 to vector<1x256xf32>
    %489 = arith.subf %488, %487 : vector<1x256xf32>
    %490 = arith.fptosi %486 : vector<1x256xf32> to vector<1x256xi32>
    %c1_i32_152 = arith.constant 1 : i32
    %491 = vector.broadcast %c1_i32_152 : i32 to vector<1x256xi32>
    %492 = arith.addi %490, %491 : vector<1x256xi32>
    %c0_i32_153 = arith.constant 0 : i32
    %493 = vector.broadcast %c0_i32_153 : i32 to vector<1x256xi32>
    %494 = arith.cmpi sge, %490, %493 : vector<1x256xi32>
    %c15_i32_154 = arith.constant 15 : i32
    %495 = vector.broadcast %c15_i32_154 : i32 to vector<1x256xi32>
    %496 = arith.cmpi sle, %490, %495 : vector<1x256xi32>
    %497 = arith.andi %494, %496 : vector<1x256xi1>
    %c0_i32_155 = arith.constant 0 : i32
    %498 = vector.broadcast %c0_i32_155 : i32 to vector<1x256xi32>
    %499 = arith.cmpi sge, %492, %498 : vector<1x256xi32>
    %c15_i32_156 = arith.constant 15 : i32
    %500 = vector.broadcast %c15_i32_156 : i32 to vector<1x256xi32>
    %501 = arith.cmpi sle, %492, %500 : vector<1x256xi32>
    %502 = arith.andi %499, %501 : vector<1x256xi1>
    %cst_157 = arith.constant 0.000000e+00 : f32
    %503 = vector.broadcast %cst_157 : f32 to vector<1x256xf32>
    %504 = arith.select %497, %489, %503 : vector<1x256xi1>, vector<1x256xf32>
    %cst_158 = arith.constant 0.000000e+00 : f32
    %505 = vector.broadcast %cst_158 : f32 to vector<1x256xf32>
    %506 = arith.select %502, %487, %505 : vector<1x256xi1>, vector<1x256xf32>
    %507 = tpu.iota {dimensions = array<i32: 0>} : vector<16x256xi32>
    %508 = vector.broadcast %490 : vector<1x256xi32> to vector<16x256xi32>
    %509 = arith.cmpi eq, %507, %508 : vector<16x256xi32>
    %510 = arith.extui %509 : vector<16x256xi1> to vector<16x256xi32>
    %511 = arith.sitofp %510 : vector<16x256xi32> to vector<16x256xf32>
    %512 = vector.broadcast %504 : vector<1x256xf32> to vector<16x256xf32>
    %513 = arith.mulf %511, %512 : vector<16x256xf32>
    %514 = vector.broadcast %492 : vector<1x256xi32> to vector<16x256xi32>
    %515 = arith.cmpi eq, %507, %514 : vector<16x256xi32>
    %516 = arith.extui %515 : vector<16x256xi1> to vector<16x256xi32>
    %517 = arith.sitofp %516 : vector<16x256xi32> to vector<16x256xf32>
    %518 = vector.broadcast %506 : vector<1x256xf32> to vector<16x256xf32>
    %519 = arith.mulf %517, %518 : vector<16x256xf32>
    %520 = arith.addf %513, %519 : vector<16x256xf32>
    %521 = arith.truncf %23 : vector<64x16xf32> to vector<64x16xbf16>
    %522 = arith.truncf %485 : vector<16x256xf32> to vector<16x256xbf16>
    %cst_159 = arith.constant dense<0.000000e+00> : vector<64x256xf32>
    %523 = tpu.matmul %521, %522, %cst_159 {dimension_numbers = #tpu.dot_dimension_numbers<[1], [0], [0], [1], [0, 0, 1, 1], [], []>} : vector<64x16xbf16>, vector<16x256xbf16>, vector<64x256xf32> -> vector<64x256xf32>
    %cst_160 = arith.constant 0.000000e+00 : f32
    %524 = vector.broadcast %cst_160 : f32 to vector<4x256xf32>
    %525 = vector.extract_strided_slice %523 {offsets = [0, 0], sizes = [4, 256], strides = [1, 1]} : vector<64x256xf32> to vector<4x256xf32>
    %526 = vector.extract_strided_slice %520 {offsets = [0, 0], sizes = [1, 256], strides = [1, 1]} : vector<16x256xf32> to vector<1x256xf32>
    %527 = vector.broadcast %526 : vector<1x256xf32> to vector<4x256xf32>
    %528 = arith.mulf %525, %527 : vector<4x256xf32>
    %529 = arith.addf %524, %528 : vector<4x256xf32>
    %530 = vector.extract_strided_slice %523 {offsets = [4, 0], sizes = [4, 256], strides = [1, 1]} : vector<64x256xf32> to vector<4x256xf32>
    %531 = vector.extract_strided_slice %520 {offsets = [1, 0], sizes = [1, 256], strides = [1, 1]} : vector<16x256xf32> to vector<1x256xf32>
    %532 = vector.broadcast %531 : vector<1x256xf32> to vector<4x256xf32>
    %533 = arith.mulf %530, %532 : vector<4x256xf32>
    %534 = arith.addf %529, %533 : vector<4x256xf32>
    %535 = vector.extract_strided_slice %523 {offsets = [8, 0], sizes = [4, 256], strides = [1, 1]} : vector<64x256xf32> to vector<4x256xf32>
    %536 = vector.extract_strided_slice %520 {offsets = [2, 0], sizes = [1, 256], strides = [1, 1]} : vector<16x256xf32> to vector<1x256xf32>
    %537 = vector.broadcast %536 : vector<1x256xf32> to vector<4x256xf32>
    %538 = arith.mulf %535, %537 : vector<4x256xf32>
    %539 = arith.addf %534, %538 : vector<4x256xf32>
    %540 = vector.extract_strided_slice %523 {offsets = [12, 0], sizes = [4, 256], strides = [1, 1]} : vector<64x256xf32> to vector<4x256xf32>
    %541 = vector.extract_strided_slice %520 {offsets = [3, 0], sizes = [1, 256], strides = [1, 1]} : vector<16x256xf32> to vector<1x256xf32>
    %542 = vector.broadcast %541 : vector<1x256xf32> to vector<4x256xf32>
    %543 = arith.mulf %540, %542 : vector<4x256xf32>
    %544 = arith.addf %539, %543 : vector<4x256xf32>
    %545 = vector.extract_strided_slice %523 {offsets = [16, 0], sizes = [4, 256], strides = [1, 1]} : vector<64x256xf32> to vector<4x256xf32>
    %546 = vector.extract_strided_slice %520 {offsets = [4, 0], sizes = [1, 256], strides = [1, 1]} : vector<16x256xf32> to vector<1x256xf32>
    %547 = vector.broadcast %546 : vector<1x256xf32> to vector<4x256xf32>
    %548 = arith.mulf %545, %547 : vector<4x256xf32>
    %549 = arith.addf %544, %548 : vector<4x256xf32>
    %550 = vector.extract_strided_slice %523 {offsets = [20, 0], sizes = [4, 256], strides = [1, 1]} : vector<64x256xf32> to vector<4x256xf32>
    %551 = vector.extract_strided_slice %520 {offsets = [5, 0], sizes = [1, 256], strides = [1, 1]} : vector<16x256xf32> to vector<1x256xf32>
    %552 = vector.broadcast %551 : vector<1x256xf32> to vector<4x256xf32>
    %553 = arith.mulf %550, %552 : vector<4x256xf32>
    %554 = arith.addf %549, %553 : vector<4x256xf32>
    %555 = vector.extract_strided_slice %523 {offsets = [24, 0], sizes = [4, 256], strides = [1, 1]} : vector<64x256xf32> to vector<4x256xf32>
    %556 = vector.extract_strided_slice %520 {offsets = [6, 0], sizes = [1, 256], strides = [1, 1]} : vector<16x256xf32> to vector<1x256xf32>
    %557 = vector.broadcast %556 : vector<1x256xf32> to vector<4x256xf32>
    %558 = arith.mulf %555, %557 : vector<4x256xf32>
    %559 = arith.addf %554, %558 : vector<4x256xf32>
    %560 = vector.extract_strided_slice %523 {offsets = [28, 0], sizes = [4, 256], strides = [1, 1]} : vector<64x256xf32> to vector<4x256xf32>
    %561 = vector.extract_strided_slice %520 {offsets = [7, 0], sizes = [1, 256], strides = [1, 1]} : vector<16x256xf32> to vector<1x256xf32>
    %562 = vector.broadcast %561 : vector<1x256xf32> to vector<4x256xf32>
    %563 = arith.mulf %560, %562 : vector<4x256xf32>
    %564 = arith.addf %559, %563 : vector<4x256xf32>
    %565 = vector.extract_strided_slice %523 {offsets = [32, 0], sizes = [4, 256], strides = [1, 1]} : vector<64x256xf32> to vector<4x256xf32>
    %566 = vector.extract_strided_slice %520 {offsets = [8, 0], sizes = [1, 256], strides = [1, 1]} : vector<16x256xf32> to vector<1x256xf32>
    %567 = vector.broadcast %566 : vector<1x256xf32> to vector<4x256xf32>
    %568 = arith.mulf %565, %567 : vector<4x256xf32>
    %569 = arith.addf %564, %568 : vector<4x256xf32>
    %570 = vector.extract_strided_slice %523 {offsets = [36, 0], sizes = [4, 256], strides = [1, 1]} : vector<64x256xf32> to vector<4x256xf32>
    %571 = vector.extract_strided_slice %520 {offsets = [9, 0], sizes = [1, 256], strides = [1, 1]} : vector<16x256xf32> to vector<1x256xf32>
    %572 = vector.broadcast %571 : vector<1x256xf32> to vector<4x256xf32>
    %573 = arith.mulf %570, %572 : vector<4x256xf32>
    %574 = arith.addf %569, %573 : vector<4x256xf32>
    %575 = vector.extract_strided_slice %523 {offsets = [40, 0], sizes = [4, 256], strides = [1, 1]} : vector<64x256xf32> to vector<4x256xf32>
    %576 = vector.extract_strided_slice %520 {offsets = [10, 0], sizes = [1, 256], strides = [1, 1]} : vector<16x256xf32> to vector<1x256xf32>
    %577 = vector.broadcast %576 : vector<1x256xf32> to vector<4x256xf32>
    %578 = arith.mulf %575, %577 : vector<4x256xf32>
    %579 = arith.addf %574, %578 : vector<4x256xf32>
    %580 = vector.extract_strided_slice %523 {offsets = [44, 0], sizes = [4, 256], strides = [1, 1]} : vector<64x256xf32> to vector<4x256xf32>
    %581 = vector.extract_strided_slice %520 {offsets = [11, 0], sizes = [1, 256], strides = [1, 1]} : vector<16x256xf32> to vector<1x256xf32>
    %582 = vector.broadcast %581 : vector<1x256xf32> to vector<4x256xf32>
    %583 = arith.mulf %580, %582 : vector<4x256xf32>
    %584 = arith.addf %579, %583 : vector<4x256xf32>
    %585 = vector.extract_strided_slice %523 {offsets = [48, 0], sizes = [4, 256], strides = [1, 1]} : vector<64x256xf32> to vector<4x256xf32>
    %586 = vector.extract_strided_slice %520 {offsets = [12, 0], sizes = [1, 256], strides = [1, 1]} : vector<16x256xf32> to vector<1x256xf32>
    %587 = vector.broadcast %586 : vector<1x256xf32> to vector<4x256xf32>
    %588 = arith.mulf %585, %587 : vector<4x256xf32>
    %589 = arith.addf %584, %588 : vector<4x256xf32>
    %590 = vector.extract_strided_slice %523 {offsets = [52, 0], sizes = [4, 256], strides = [1, 1]} : vector<64x256xf32> to vector<4x256xf32>
    %591 = vector.extract_strided_slice %520 {offsets = [13, 0], sizes = [1, 256], strides = [1, 1]} : vector<16x256xf32> to vector<1x256xf32>
    %592 = vector.broadcast %591 : vector<1x256xf32> to vector<4x256xf32>
    %593 = arith.mulf %590, %592 : vector<4x256xf32>
    %594 = arith.addf %589, %593 : vector<4x256xf32>
    %595 = vector.extract_strided_slice %523 {offsets = [56, 0], sizes = [4, 256], strides = [1, 1]} : vector<64x256xf32> to vector<4x256xf32>
    %596 = vector.extract_strided_slice %520 {offsets = [14, 0], sizes = [1, 256], strides = [1, 1]} : vector<16x256xf32> to vector<1x256xf32>
    %597 = vector.broadcast %596 : vector<1x256xf32> to vector<4x256xf32>
    %598 = arith.mulf %595, %597 : vector<4x256xf32>
    %599 = arith.addf %594, %598 : vector<4x256xf32>
    %600 = vector.extract_strided_slice %523 {offsets = [60, 0], sizes = [4, 256], strides = [1, 1]} : vector<64x256xf32> to vector<4x256xf32>
    %601 = vector.extract_strided_slice %520 {offsets = [15, 0], sizes = [1, 256], strides = [1, 1]} : vector<16x256xf32> to vector<1x256xf32>
    %602 = vector.broadcast %601 : vector<1x256xf32> to vector<4x256xf32>
    %603 = arith.mulf %600, %602 : vector<4x256xf32>
    %604 = arith.addf %599, %603 : vector<4x256xf32>
    %605 = arith.subf %604, %436 : vector<4x256xf32>
    %606 = vector.broadcast %308 : vector<1x256xf32> to vector<4x256xf32>
    %607 = arith.mulf %606, %605 : vector<4x256xf32>
    %608 = arith.addf %436, %607 : vector<4x256xf32>
    %c0_161 = arith.constant 0 : index
    %c0_162 = arith.constant 0 : index
    %c0_163 = arith.constant 0 : index
    %609 = vector.load %arg5[%c0_161, %c0_162, %c0_163] : memref<1x4x256xf32, #tpu.memory_space<vmem>>, vector<1x4x256xf32>
    %610 = vector.shape_cast %609 : vector<1x4x256xf32> to vector<4x256xf32>
    %611 = vector.shape_cast %608 : vector<4x256xf32> to vector<1x4x256xf32>
    tpu.vector_store %arg5[%c0_161, %c0_162, %c0_163], %611 {strides = array<i32>} : memref<1x4x256xf32, #tpu.memory_space<vmem>>, vector<1x4x256xf32>,
    return
  }
  func.func @transform_0(%arg0: i32) -> (i32, i32, i32) {
    %c0_i32 = arith.constant 0 : i32
    %c0_i32_0 = arith.constant 0 : i32
    %c0_i32_1 = arith.constant 0 : i32
    return %arg0, %c0_i32, %c0_i32_0 : i32, i32, i32
  }
  func.func @transform_1(%arg0: i32) -> (i32, i32, i32) {
    %c0_i32 = arith.constant 0 : i32
    %c0_i32_0 = arith.constant 0 : i32
    %c0_i32_1 = arith.constant 0 : i32
    return %arg0, %c0_i32, %c0_i32_0 : i32, i32, i32
  }
  func.func @transform_2(%arg0: i32) -> (i32, i32, i32) {
    %c0_i32 = arith.constant 0 : i32
    %c0_i32_0 = arith.constant 0 : i32
    %c0_i32_1 = arith.constant 0 : i32
    return %arg0, %c0_i32, %c0_i32_0 : i32, i32, i32
  }
  func.func @transform_3(%arg0: i32) -> (i32, i32, i32) {
    %c0_i32 = arith.constant 0 : i32
    %c0_i32_0 = arith.constant 0 : i32
    %c0_i32_1 = arith.constant 0 : i32
    %c0_i32_2 = arith.constant 0 : i32
    return %c0_i32, %c0_i32_0, %c0_i32_1 : i32, i32, i32
  }
  func.func @transform_4(%arg0: i32) -> (i32, i32, i32) {
    %c0_i32 = arith.constant 0 : i32
    %c0_i32_0 = arith.constant 0 : i32
    %c0_i32_1 = arith.constant 0 : i32
    return %arg0, %c0_i32, %c0_i32_0 : i32, i32, i32
  }
}

</mosaic_0001>

<bundles_post_ra>
// kernel: tpu_custom_call.1
= control target key start
LH: loop header
LB: loop body
LE: loop exit
PB: predicated region body
PF: predicated region fallthrough
CT: control target
= control target key end

     0   :  { %9 = vsyncpa [#allocation4], 0  ;;  %s3041_s0 = inlined_call_operand.vmem [shape: f32[2,4,256], index: 0, kind: input, shape index: {}]   ;;  %s3042_s1 = inlined_call_operand.vmem [shape: f32[2,64,16], index: 1, kind: input, shape index: {}]   ;;  %s3043_s2 = inlined_call_operand.vmem [shape: f32[2,32,8], index: 2, kind: input, shape index: {}]   ;;  %s3044_s3 = inlined_call_operand.vmem [shape: f32[9,5,8], index: 3, kind: input, shape index: {}]   ;;  %s3045_s4 = inlined_call_operand.hbm [shape: f32[2,4,256], index: 4, kind: output, shape index: {}]  }
   0x1   :  { %11 = vsyncpa [#allocation4 + $0x1], 0  ;;  %s2270_s15 = smov 0   ;;  %s2272_s16 = smov 0  }
   0x2   :  { %s2274_s17 = smov 0   ;;  %s2276_s18 = smov 0  }
   0x3 LB: > { %s2291_s19 = sadd.s32 4294967295, %s2233_s18   ;;  %s1942_s20 = sadd.s32 4294967294, %s2233_s18   ;;  %s2233_s18 = sphi %s2276_s18, %s3134_s18   ;;  %s2229_s17 = sphi %s2274_s17, %s3133_s17   ;;  %s2225_s16 = sphi %s2272_s16, %s3132_s16   ;;  %s2221_s15 = sphi %s2270_s15, %s3131_s15  }
   0x4   : > { %s2295_s21 = sadd.s32 1, %s2233_s18   ;;  %s123_s22 = sadd.s32 1, %s2229_s17 }
   0x5   : > { %s120_s23 = ssub.s32 %s2233_s18, %s2295_s21  ;;  %p133_p0 = scmp.ne.s32.totalorder %s2229_s17, %s2225_s16 }
   0x6   : > { %p121_p1 = scmp.eq.s32.totalorder %s120_s23, 0  ;;  %p134_p2 = scmp.eq.s32.totalorder %s2291_s19, 1 }
   0x7   : > { %p139_p3 = scmp.ne.s32.totalorder %s2225_s16, %s2221_s15  ;;  %p140_p4 = scmp.eq.s32.totalorder %s1942_s20, 1 }
   0x8   : > { %s2306_s24 = scalar_select %p121_p1, %s2229_s17, %s123_s22  }
   0x9   : > { %p2308_p5 = por %p134_p2, %p133_p0  ;;  %p2312_p6 = por %p140_p4, %p139_p3 }
   0xa   : > { %p1945_p7 = scmp.ge.s32.totalorder %s2233_s18, 1  ;;  %p185_p8 = scmp.lt.s32.totalorder %s2233_s18, 3 }
   0xc   : > { %p186_p9 = pnand %p1945_p7, %p185_p8 }
   0xd   : > { %p221_p10 = scmp.lt.s32.totalorder (!%p186_p9), %s2291_s19, 1  ;;  %s2237_s10 = smov (!%p186_p9), 15  }
   0xe   : > { %189 = sbr.rel (%p186_p9) target bundleno = 782 (0x30e), region = 36  ;;  %s2238_s11 = smov (!%p186_p9), 16  }
   0xf   : > { %s2239_s12 = smov (!%p186_p9), 17   ;;  %s2240_s13 = smov (!%p186_p9), 127  }
  0x10   : > { %s2241_s14 = smov (!%p186_p9), 1   ;;  %s2242_s20 = smov (!%p186_p9), 112  }
  0x11   : > { %s2243_s22 = smov (!%p186_p9), 113   ;;  %s2244_s23 = smov (!%p186_p9), 111  }
  0x13   : > { %v237_v0 = vlaneseq  ;;  %v2235_v1 = vmov 16.0   ;;  %s2320_s27 = scalar_select %p221_p10, %s2291_s19, 1  ;;  %v2236_v46 = vmov 0.0  }
  0x14   : > { %2159 = vrcp.f32 %v2235_v1 }
  0x15   : > { %v238_v2 = vand.u32 127, %v237_v0  ;;  %s2040_s28 = sshll.u32 %s2320_s27, 3  ;;  %s2042_s29 = sshll.u32 %s2320_s27, 5  ;;  %v2360_v36 = vshrl.u32 %v237_v0, 7 }
  0x16   : > { %s225_s6 = scalar_lea.vmem %s3041_s0, %s2040_s28  ;;  %s2330_s9 = scalar_lea.vmem %s3043_s2, %s2042_s29 }
  0x17   : > { %v239_v5 = vadd.s32 128, %v238_v2  ;;  %v240_v8 = vcvt.s32.f32 %v238_v2  ;;  %v269_v14 = vld [vmem:[%s225_s6] sm:$0xff]  ;;  %v2337_v17 = vld [vmem:[%s2330_s9 + $0x8] sm:$0xff]  ;;  %v280_v60 = vld [vmem:[%s2330_s9 + $0x10] sm:$0xff]  ;;  %s2041_s5 = sshll.u32 %s2320_s27, 6 }
  0x18   : > { %531 = vst [vmem:[#allocation1 + $0x1] ss:$2 sm:$0xff] %v269_v14  ;;  %v2340_v18 = vld [vmem:[%s2330_s9] sm:$0xff]  ;;  %v281_v61 = vld [vmem:[%s2330_s9 + $0x18] sm:$0xff]  ;;  %s2748_s7 = scalar_lea.vmem %s3042_s1, %s2041_s5  ;;  %s2191_s5 = scalar_lea.hbm %s3045_s4, 16 }
  0x19   : > { %v241_v9 = vcvt.s32.f32 %v239_v5  ;;  %v2344_v19 = vpack.c.bf16 %v2337_v17, %v2340_v18 }
  0x1a   : > { %v2160_v3 = vpop.eup %2159 }
  0x1b   : > { %v243_v4 = vmul.f32 16.0, %v2160_v3  ;;  %vm247_vm0 = vweird.f32 %v2160_v3 }
  0x1d   : > { %v244_v6 = vsub.f32 1.0, %v243_v4 }
  0x1f   : > { %v245_v7 = vmul.f32 %v2160_v3, %v244_v6 }
  0x21   : > { %v246_v10 = vadd.f32 %v2160_v3, %v245_v7 }
  0x23   : > { %v248_v11 = vsel %vm247_vm0, %v2160_v3, %v246_v10 }
  0x24   : > { %v249_v12 = vmul.f32 %v248_v11, %v240_v8  ;;  %v250_v13 = vmul.f32 %v248_v11, %v241_v9 }
  0x26   : > { %v2332_v15 = vfloor.f32 %v249_v12  ;;  %v2334_v16 = vfloor.f32 %v250_v13 }
  0x28   : > { %v253_v20 = vmul.f32 16.0, %v2332_v15  ;;  %v254_v21 = vmul.f32 16.0, %v2334_v16  ;;  %v263_v62 = vmul.f32 2.0, %v2332_v15  ;;  %v264_v63 = vmul.f32 2.0, %v2334_v16 }
  0x2a   : > { %v2348_v22 = vsub.f32 %v240_v8, %v253_v20  ;;  %v2350_v23 = vsub.f32 %v241_v9, %v254_v21  ;;  %v265_v0 = vmul.f32 0.06666667, %v263_v62  ;;  %v266_v1 = vmul.f32 0.06666667, %v264_v63 }
  0x2c   : > { %v257_v24 = vmul.f32 2.0, %v2348_v22  ;;  %v258_v25 = vmul.f32 2.0, %v2350_v23  ;;  %v2386_v2 = vadd.f32 -1.0, %v265_v0  ;;  %v2388_v3 = vadd.f32 -1.0, %v266_v1 }
  0x2e   : > { %v259_v26 = vmul.f32 0.06666667, %v257_v24  ;;  %v260_v27 = vmul.f32 0.06666667, %v258_v25  ;;  %v290_v4 = vadd.f32 1.0, %v2386_v2  ;;  %v291_v5 = vadd.f32 1.0, %v2388_v3 }
  0x30   : > { %v2354_v28 = vadd.f32 -1.0, %v259_v26  ;;  %v2356_v29 = vadd.f32 -1.0, %v260_v27  ;;  %v292_v6 = vmul.f32 3.5, %v290_v4  ;;  %v293_v7 = vmul.f32 3.5, %v291_v5 }
  0x32   : > { %v286_v30 = vadd.f32 1.0, %v2354_v28  ;;  %v287_v31 = vadd.f32 1.0, %v2356_v29  ;;  %v340_v8 = vfloor.f32 %v292_v6  ;;  %v341_v9 = vfloor.f32 %v293_v7 }
  0x34   : > { %v288_v32 = vmul.f32 3.5, %v286_v30  ;;  %v289_v33 = vmul.f32 3.5, %v287_v31  ;;  %v2051_v10 = vcvt.f32.s32 %v340_v8  ;;  %v2053_v11 = vcvt.f32.s32 %v341_v9 }
  0x35   : > { %v342_v13 = vsub.f32 %v292_v6, %v340_v8 }
  0x36   : > { %v294_v34 = vfloor.f32 %v288_v32  ;;  %v295_v35 = vfloor.f32 %v289_v33  ;;  %v348_v12 = vadd.s32 1, %v2051_v10  ;;  %v349_v14 = vadd.s32 1, %v2053_v11 }
  0x38   : > { %v296_v37 = vsub.f32 %v288_v32, %v294_v34  ;;  %v2047_v38 = vcvt.f32.s32 %v294_v34  ;;  %v297_v39 = vsub.f32 %v289_v33, %v295_v35  ;;  %v2049_v40 = vcvt.f32.s32 %v295_v35 }
  0x3a   : > { %v298_v41 = vsub.f32 1.0, %v296_v37  ;;  %v302_v42 = vadd.s32 1, %v2047_v38  ;;  %vm304_vm1 = vcmp.ge.s32.totalorder %v2047_v38, 0  ;;  %vm306_vm2 = vcmp.le.s32.totalorder %v2047_v38, 7 }
  0x3b   : > { %vm308_vm3 = vmand %vm304_vm1, %vm306_vm2  ;;  %vm322_vm4 = vcmp.eq.s32.totalorder %v2360_v36, %v2047_v38  ;;  %v299_v43 = vsub.f32 1.0, %v297_v39  ;;  %v303_v44 = vadd.s32 1, %v2049_v40  ;;  %vm305_vm5 = vcmp.ge.s32.totalorder %v2049_v40, 0 }
  0x3c   : > { %vm310_vm6 = vcmp.ge.s32.totalorder %v302_v42, 0  ;;  %vm312_vm7 = vcmp.le.s32.totalorder %v302_v42, 7  ;;  %v316_v45 = vsel %vm308_vm3, %v298_v41, 0.0  ;;  %v1957_v47 = vsel %vm322_vm4, 1.0, %v2236_v46 }
  0x3d   : > { %vm314_vm8 = vmand %vm310_vm6, %vm312_vm7  ;;  %v328_v48 = vmul.f32 %v1957_v47, %v316_v45  ;;  %vm330_vm9 = vcmp.eq.s32.totalorder %v2360_v36, %v302_v42  ;;  %vm307_vm10 = vcmp.le.s32.totalorder %v2049_v40, 7  ;;  %vm311_vm11 = vcmp.ge.s32.totalorder %v303_v44, 0  ;;  %v532_v42 = vld.sshfl [vmem:[#allocation1] sm:$0xff pattern:$0x75316420] }
  0x3e   : > { %v318_v49 = vsel %vm314_vm8, %v296_v37, 0.0  ;;  %v1959_v50 = vsel %vm330_vm9, 1.0, %v2236_v46  ;;  %vm309_vm12 = vmand %vm305_vm5, %vm307_vm10  ;;  %vm313_vm13 = vcmp.le.s32.totalorder %v303_v44, 7  ;;  %vm323_vm14 = vcmp.eq.s32.totalorder %v2360_v36, %v2049_v40  ;;  %536 = vst [vmem:[#allocation2] sm:$0xf0] %v532_v42 }
  0x3f   : > { %v336_v51 = vmul.f32 %v1959_v50, %v318_v49  ;;  %vm315_vm15 = vmand %vm311_vm11, %vm313_vm13  ;;  %v317_v52 = vsel %vm309_vm12, %v299_v43, 0.0  ;;  %v1958_v53 = vsel %vm323_vm14, 1.0, %v2236_v46  ;;  %vm331_vm0 = vcmp.eq.s32.totalorder %v2360_v36, %v303_v44  ;;  %v533_v43 = vld.sshfl [vmem:[#allocation1 + $0x8] sm:$0xff pattern:$0x75316420] }
  0x40   : > { %v319_v54 = vsel %vm315_vm15, %v297_v39, 0.0  ;;  %v329_v55 = vmul.f32 %v1958_v53, %v317_v52  ;;  %v1960_v56 = vsel %vm331_vm0, 1.0, %v2236_v46  ;;  %vm3046_vm1 = vcmask 64512   ;;  %537 = vst [vmem:[#allocation2 + $0x8] sm:$0xf0] %v533_v43 }
  0x41   : > { %v338_v57 = vadd.f32 %v336_v51, %v328_v48  ;;  %v337_v58 = vmul.f32 %v1960_v56, %v319_v54  ;;  %vm350_vm2 = vcmp.ge.s32.totalorder %v2051_v10, 0  ;;  %vm352_vm3 = vcmp.le.s32.totalorder %v2051_v10, 7 }
  0x42   : > { %vm356_vm4 = vcmp.ge.s32.totalorder %v348_v12, 0  ;;  %vm358_vm5 = vcmp.le.s32.totalorder %v348_v12, 7  ;;  %vm351_vm6 = vcmp.ge.s32.totalorder %v2053_v11, 0  ;;  %vm353_vm7 = vcmp.le.s32.totalorder %v2053_v11, 7  ;;  %vm354_vm8 = vmand %vm350_vm2, %vm352_vm3 }
  0x43   : > { %2044 = vmatpush.msra.mxu2 %v338_v57  ;;  %v339_v59 = vadd.f32 %v337_v58, %v329_v55  ;;  %412 = vmatpush.msra.mxu0 %v338_v57  ;;  %vm357_vm9 = vcmp.ge.s32.totalorder %v349_v14, 0  ;;  %vm359_vm10 = vcmp.le.s32.totalorder %v349_v14, 7  ;;  %vm2392_vm11 = vmand %vm356_vm4, %vm358_vm5  ;;  %vm366_vm12 = vcmp.eq.s32.totalorder %v2360_v36, %v2051_v10 }
  0x44   : > { %1966 = vmatmul.msk.f32.vlgmr.msra.gmra.mxu2 %vm3046_vm1, %v2337_v17  ;;  %1965 = vmatmul.msk.f32.vlgmr.msra.gmra.mxu0 %vm3046_vm1, %v2340_v18  ;;  %vm374_vm13 = vcmp.eq.s32.totalorder %v2360_v36, %v348_v12  ;;  %vm355_vm14 = vmand %vm351_vm6, %vm353_vm7  ;;  %vm367_vm0 = vcmp.eq.s32.totalorder %v2360_v36, %v2053_v11  ;;  %v364_v25 = vsel %vm2392_vm11, %v342_v13, 0.0  ;;  %v1961_v26 = vsel %vm366_vm12, 1.0, %v2236_v46 }
  0x45   : > { %2045 = vmatpush.msra.mxu3 %v339_v59  ;;  %441 = vmatpush.msra.mxu1 %v339_v59  ;;  %vm361_vm15 = vmand %vm357_vm9, %vm359_vm10  ;;  %v1963_v27 = vsel %vm374_vm13, 1.0, %v2236_v46  ;;  %v1962_v32 = vsel %vm367_vm0, 1.0, %v2236_v46  ;;  %vm599_vm3 = vcmask 138240   ;;  %vm3047_vm4 = vcmask 130048  }
  0x46   : > { %1970 = vmatmul.msk.f32.vlgmr.msra.gmra.mxu3 %vm3046_vm1, %v2337_v17  ;;  %1969 = vmatmul.msk.f32.vlgmr.msra.gmra.mxu1 %vm3046_vm1, %v2340_v18  ;;  %v343_v17 = vsub.f32 %v293_v7, %v341_v9  ;;  %v344_v18 = vsub.f32 1.0, %v342_v13  ;;  %v380_v35 = vmul.f32 %v1963_v27, %v364_v25  ;;  %vm731_vm5 = vcmask 121856  }
  0x47   : > { %vm797_vm9 = vcmask 7168   ;;  %vm924_vm10 = vcmask 1039360   ;;  %vm990_vm13 = vcmask 924672  }
  0x48   : > { %v345_v21 = vsub.f32 1.0, %v343_v17  ;;  %v362_v24 = vsel %vm354_vm8, %v344_v18, 0.0  ;;  %v365_v31 = vsel %vm361_vm15, %v343_v17, 0.0  ;;  %vm1056_vm15 = vcmask 916480  }
  0x49   : > { %v372_v34 = vmul.f32 %v1961_v26, %v362_v24 }
  0x4a   : > { %v363_v30 = vsel %vm355_vm14, %v345_v21, 0.0  ;;  %vm1122_vm14 = vcmask 908288  }
  0x4b   : > { %v373_v37 = vmul.f32 %v1962_v32, %v363_v30  ;;  %v382_v39 = vadd.f32 %v380_v35, %v372_v34 }
  0x4c   : > { %1967 = vmatmul.msk.f32.gmra.mxu2 %vm3046_vm1, %v280_v60 }
  0x4d   : > { %v461_v41 = vperm.slane %v382_v39, 1  ;;  %v455_v47 = vperm.slane %v382_v39, 0  ;;  %v473_v54 = vperm.slane %v382_v39, 2  ;;  %v479_v55 = vperm.slane %v382_v39, 3 }
  0x4e   : > { %1971 = vmatmul.msk.f32.gmra.mxu3 %vm3046_vm1, %v280_v60  ;;  %v491_v6 = vperm.slane %v382_v39, 4  ;;  %v497_v7 = vperm.slane %v382_v39, 5  ;;  %v515_v32 = vperm.slane %v382_v39, 7 }
  0x54   : > { %1968 = vmatmul.msk.f32.gmra.mxu2 %vm3046_vm1, %v281_v61 }
  0x56   : > { %1972 = vmatmul.msk.f32.gmra.mxu3 %vm3046_vm1, %v281_v61  ;;  %vm375_vm1 = vcmp.eq.s32.totalorder %v2360_v36, %v349_v14 }
  0x57   : > { %v1964_v33 = vsel %vm375_vm1, 1.0, %v2236_v46  ;;  %vm3054_vm1 = vcmask 64512  }
  0x58   : > { %v381_v38 = vmul.f32 %v1964_v33, %v365_v31  ;;  %v509_v31 = vperm.slane %v382_v39, 6  ;;  %vm3055_vm2 = vmmov %vm3054_vm1 }
  0x59   : > { %vm3056_vm6 = vmmov %vm3054_vm1 }
  0x5a   : > { %v2406_v40 = vadd.f32 %v381_v38, %v373_v37  ;;  %vm3057_vm7 = vmmov %vm3054_vm1 }
  0x5b   : > { %vm3058_vm8 = vmmov %vm3054_vm1 }
  0x5c   : > { %v462_v44 = vperm.slane %v2406_v40, 1  ;;  %v456_v50 = vperm.slane %v2406_v40, 0  ;;  %v474_v59 = vperm.slane %v2406_v40, 2  ;;  %v480_v60 = vperm.slane %v2406_v40, 3  ;;  %vm3059_vm11 = vmmov %vm3054_vm1 }
  0x5d   : > { %v492_v10 = vperm.slane %v2406_v40, 4  ;;  %v498_v11 = vperm.slane %v2406_v40, 5  ;;  %v510_v35 = vperm.slane %v2406_v40, 6  ;;  %v516_v37 = vperm.slane %v2406_v40, 7  ;;  %vm3060_vm12 = vmmov %vm3054_vm1 }
  0x5e   : > { %vm3061_vm0 = vmmov %vm3054_vm1 }
  0xc1   : > { %v414_v45 = vpop.f32.mrf.mxu0 }
  0xc2   : > { %v463_v48 = vmul.f32 %v461_v41, %v414_v45  ;;  %v457_v52 = vmul.f32 %v455_v47, %v414_v45 }
  0xc3   : > { %v443_v49 = vpop.f32.mrf.mxu1 }
  0xc4   : > { %v464_v51 = vmul.f32 %v462_v44, %v443_v49  ;;  %v467_v53 = vrot.slane %v463_v48, 4  ;;  %v458_v56 = vmul.f32 %v456_v50, %v443_v49 }
  0xc6   : > { %v468_v57 = vrot.slane %v464_v51, 4  ;;  %v471_v62 = vadd.f32 %v467_v53, %v457_v52 }
  0xc7   : > { %v417_v58 = vpop.f32.mrf.mxu2 }
  0xc8   : > { %v475_v63 = vmul.f32 %v473_v54, %v417_v58  ;;  %v481_v0 = vmul.f32 %v479_v55, %v417_v58  ;;  %v472_v1 = vadd.f32 %v468_v57, %v458_v56  ;;  %v586_v56 = vld [vmem:[#allocation2 + $0x18] sm:$0xff]  ;;  %v912_v57 = vld [vmem:[#allocation2 + $0x10] sm:$0xff] }
  0xc9   : > { %v446_v61 = vpop.f32.mrf.mxu3 }
  0xca   : > { %v476_v4 = vmul.f32 %v474_v59, %v446_v61  ;;  %v482_v5 = vmul.f32 %v480_v60, %v446_v61  ;;  %v477_v8 = vadd.f32 %v475_v63, %v471_v62  ;;  %v485_v9 = vrot.slane %v481_v0, 4  ;;  %v1984_v61 = vld [vmem:[%s3044_s3 + $0x20] sm:$0x1f] }
  0xcc   : > { %v478_v12 = vadd.f32 %v476_v4, %v472_v1  ;;  %v486_v13 = vrot.slane %v482_v5, 4  ;;  %v489_v21 = vadd.f32 %v485_v9, %v477_v8  ;;  %v589_v9 = vld [vmem:[%s3044_s3] sm:$0x1f] }
  0xce   : > { %v490_v26 = vadd.f32 %v486_v13, %v478_v12 }
  0xcf   : > { %v420_v14 = vpop.f32.mrf.mxu2 }
  0xd0   : > { %v493_v17 = vmul.f32 %v491_v6, %v420_v14  ;;  %v499_v18 = vmul.f32 %v497_v7, %v420_v14 }
  0xd1   : > { %v449_v20 = vpop.f32.mrf.mxu3 }
  0xd2   : > { %v494_v24 = vmul.f32 %v492_v10, %v449_v20  ;;  %v500_v25 = vmul.f32 %v498_v11, %v449_v20  ;;  %v495_v27 = vadd.f32 %v493_v17, %v489_v21  ;;  %v503_v30 = vrot.slane %v499_v18, 4  ;;  %v1975_v21 = vld [vmem:[%s3044_s3 + $0x8] sm:$0x1f] }
  0xd4   : > { %v496_v33 = vadd.f32 %v494_v24, %v490_v26  ;;  %v504_v34 = vrot.slane %v500_v25, 4  ;;  %v507_v41 = vadd.f32 %v503_v30, %v495_v27 }
  0xd6   : > { %v508_v44 = vadd.f32 %v504_v34, %v496_v33  ;;  %v1978_v33 = vld [vmem:[%s3044_s3 + $0x10] sm:$0x1f] }
  0xd7   : > { %v423_v38 = vpop.f32.mrf.mxu2 }
  0xd8   : > { %v511_v42 = vmul.f32 %v509_v31, %v423_v38  ;;  %v517_v43 = vmul.f32 %v515_v32, %v423_v38 }
  0xd9   : > { %v452_v45 = vpop.f32.mrf.mxu3 }
  0xda   : > { %v513_v47 = vadd.f32 %v511_v42, %v507_v41  ;;  %v521_v48 = vrot.slane %v517_v43, 4  ;;  %v512_v49 = vmul.f32 %v510_v35, %v452_v45  ;;  %v518_v50 = vmul.f32 %v516_v37, %v452_v45 }
  0xdc   : > { %v525_v51 = vadd.f32 %v521_v48, %v513_v47  ;;  %v514_v52 = vadd.f32 %v512_v49, %v508_v44  ;;  %v522_v53 = vrot.slane %v518_v50, 4 }
  0xde   : > { %527 = vst [vmem:[#allocation2] sm:$0xf] %v525_v51  ;;  %v526_v39 = vadd.f32 %v522_v53, %v514_v52  ;;  %v1981_v52 = vld [vmem:[%s3044_s3 + $0x18] sm:$0x1f]  ;;  %v1990_v53 = vld [vmem:[%s3044_s3 + $0x30] sm:$0x1f] }
  0xe0   : > { %528 = vst [vmem:[#allocation2 + $0x8] sm:$0xf] %v526_v39 }
  0xe5   : > { %v587_v54 = vld [vmem:[#allocation2] sm:$0xff] }
  0xe6   : > { %875 = vmatpush.msrb.mxu0 %v587_v54 }
  0xe7   : > { %v588_v55 = vld [vmem:[#allocation2 + $0x8] sm:$0xff]  ;;  %1985 = vmatmul.msk.f32.vlgmr.msrb.gmra.mxu0 %vm3055_vm2, %v1984_v61  ;;  %vm3063_vm2 = vmmov %vm3061_vm0 }
  0xe8   : > { %895 = vmatpush.msrb.mxu1 %v588_v55  ;;  %v2129_v40 = vpack.i.bf16 %v588_v55, %v587_v54  ;;  %v2139_v58 = vpack.i.bf16 %v912_v57, %v588_v55 }
  0xe9   : > { %1986 = vmatmul.msk.f32.vlgmr.msrb.gmra.mxu1 %vm3054_vm1, %v1984_v61  ;;  %vm3062_vm1 = vmmov %vm3061_vm0 }
  0xea   : > { %2130 = vrot.lane.b32.xlu2 %v2129_v40, %s2237_s10  ;;  %2125 = vrot.lane.b32.xlu1 %v2129_v40, %s2238_s11 }
  0xeb   : > { %2120 = vrot.lane.b32.xlu0 %v2129_v40, %s2239_s12 }
  0xf2   : > { %725 = vrot.lane.b32.xlu2 %v586_v56, %s2237_s10  ;;  %659 = vrot.lane.b32.xlu1 %v586_v56, %s2238_s11  ;;  %s2043_s10 = sshll.u32 %s2291_s19, 3 }
  0xf3   : > { %593 = vrot.lane.b32.xlu0 %v586_v56, %s2239_s12 }
  0xfa   : > { %2140 = vrot.lane.b32.xlu2 %v2139_v58, %s2240_s13  ;;  %791 = vrot.lane.b32.xlu1 %v586_v56, %s2241_s14 }
  0xfb   : > { %2135 = vrot.lane.b32.xlu0 %v2129_v40, %s2241_s14 }
 0x102   : > { %2150 = vrot.lane.b32.xlu2 %v2139_v58, %s2242_s20  ;;  %2145 = vrot.lane.b32.xlu1 %v2139_v58, %s2243_s22 }
 0x103   : > { %918 = vrot.lane.b32.xlu0 %v587_v54, %s2240_s13  ;;  %s1854_s13 = scalar_lea.hbm %s3045_s4, %s2043_s10 }
 0x10a   : > { %2155 = vrot.lane.b32.xlu2 %v2139_v58, %s2244_s23  ;;  %1050 = vrot.lane.b32.xlu1 %v587_v54, %s2242_s20  ;;  %v1987_v58 = vld [vmem:[%s3044_s3 + $0x28] sm:$0x1f] }
 0x10b   : > { %984 = vrot.lane.b32.xlu0 %v587_v54, %s2243_s22  ;;  %s1858_s22 = sshll.u32 %s1854_s13, 4  ;;  %s1859_s22 = int_to_ptr.hbm [resolvable:$true] %s1858_s22 }
 0x113   : > { %1116 = vrot.lane.b32.xlu0 %v587_v54, %s2244_s23  ;;  %s2185_s23 = sshra.s32 %s1859_s22, 4  ;;  %s2186_s23 = int_to_ptr.hbm [resolvable:$true] %s2185_s23 }
 0x114   : > { %s2187_s28 = scalar_lea.hbm %s2186_s23, 8  ;;  %p2192_p0 = scmp.lt.s32.totalorder %s2186_s23, %s3045_s4 }
 0x115   : > { %p2188_p11 = scmp.ne.s32.totalorder %s2186_s23, %s2187_s28  ;;  %p2193_p1 = scmp.lt.s32.totalorder %s2191_s5, %s2187_s28 }
 0x117   : > { %p2189_p12 = pnand %p2188_p11, %p2308_p5  ;;  %p2194_p2 = por %p2193_p1, %p2192_p0 }
 0x119   : > { %p2190_p13 = pneg %p2189_p12 }
 0x11b   : > { %p2195_p3 = pnand %p2194_p2, %p2190_p13 }
 0x144   : > { %v2131_v59 = vpop.permute.xlu2 %2130 }
 0x145   : > { %v2133_v7 = vunpack.i.h.bf16 %v2131_v59  ;;  %v2132_v8 = vunpack.i.l.bf16 %v2131_v59  ;;  %v1996_v59 = vld [vmem:[%s3044_s3 + $0x40] sm:$0x1f] }
 0x147   : > { %v733_v12 = vsel %vm731_vm5, %v2132_v8, %v2133_v7 }
 0x14c   : > { %v726_v60 = vpop.permute.xlu2 %725 }
 0x14d   : > { %v732_v24 = vsel %vm731_vm5, %v726_v60, %v2132_v8  ;;  %vm3065_vm5 = vmmov %vm3061_vm0  ;;  %v562_v8 = vadd.f32 -1.0, %v2332_v15 }
 0x154   : > { %v2141_v63 = vpop.permute.xlu2 %2140 }
 0x155   : > { %v2143_v27 = vunpack.i.h.bf16 %v2141_v63  ;;  %v2142_v30 = vunpack.i.l.bf16 %v2141_v63 }
 0x157   : > { %v926_v38 = vsel %vm924_vm10, %v2142_v30, %v2143_v27 }
 0x15c   : > { %v2126_v62 = vpop.permute.xlu1 %2125  ;;  %v2151_v20 = vpop.permute.xlu2 %2150 }
 0x15d   : > { %v2128_v0 = vunpack.i.h.bf16 %v2126_v62  ;;  %v2127_v1 = vunpack.i.l.bf16 %v2126_v62  ;;  %v2121_v4 = vpop.permute.xlu0 %2120  ;;  %v2153_v48 = vunpack.i.h.bf16 %v2151_v20  ;;  %v2152_v49 = vunpack.i.l.bf16 %v2151_v20  ;;  %v1993_v62 = vld [vmem:[%s3044_s3 + $0x38] sm:$0x1f] }
 0x15e   : > { %v2123_v5 = vunpack.i.h.bf16 %v2121_v4  ;;  %v2122_v6 = vunpack.i.l.bf16 %v2121_v4 }
 0x15f   : > { %v667_v11 = vsel %vm3047_vm4, %v2127_v1, %v2128_v0  ;;  %v1058_v54 = vsel %vm1056_vm15, %v2152_v49, %v2153_v48  ;;  %v539_v0 = vadd.f32 -1.0, %v2350_v23 }
 0x160   : > { %v601_v10 = vsel %vm599_vm3, %v2122_v6, %v2123_v5 }
 0x161   : > { %642 = vmatpush.msrb.mxu3 %v601_v10  ;;  %v555_v10 = vadd.f32 1.0, %v2350_v23 }
 0x162   : > { %1974 = vmatmul.msk.f32.vlgmr.msrb.gmra.mxu3 %vm3056_vm6, %v589_v9  ;;  %vm3066_vm6 = vmmov %vm3061_vm0 }
 0x163   : > { %708 = vmatpush.msra.mxu3 %v667_v11 }
 0x164   : > { %v660_v13 = vpop.permute.xlu1 %659  ;;  %v2156_v37 = vpop.permute.xlu2 %2155 }
 0x165   : > { %774 = vmatpush.msrb.mxu3 %v733_v12  ;;  %v594_v14 = vpop.permute.xlu0 %593  ;;  %v666_v17 = vsel %vm3047_vm4, %v660_v13, %v2127_v1  ;;  %v2158_v41 = vunpack.i.h.bf16 %v2156_v37  ;;  %v2157_v42 = vunpack.i.l.bf16 %v2156_v37  ;;  %v563_v1 = vadd.f32 -1.0, %v2334_v16 }
 0x166   : > { %v600_v18 = vsel %vm599_vm3, %v594_v14, %v2122_v6  ;;  %vm3064_vm3 = vmmov %vm3061_vm0  ;;  %v538_v6 = vadd.f32 -1.0, %v2348_v22  ;;  %v3076_v12 = vmov 0  ;;  %vm575_vm4 = vcmp.le.f32.partialorder %v2334_v16, 15.0 }
 0x167   : > { %622 = vmatpush.msrb.mxu2 %v600_v18  ;;  %v1124_v39 = vsel %vm1122_vm14, %v2157_v42, %v2158_v41 }
 0x168   : > { %1973 = vmatmul.msk.f32.vlgmr.msrb.gmra.mxu2 %vm3057_vm7, %v589_v9  ;;  %vm3067_vm7 = vmmov %vm3061_vm0 }
 0x169   : > { %688 = vmatpush.msra.mxu2 %v666_v17  ;;  %v897_v17 = vpop.f32.mrf.mxu1 }
 0x16a   : > { %1977 = vmatmul.msk.f32.vlgmr.msra.gmra.mxu3 %vm3058_vm8, %v1975_v21  ;;  %vm3068_vm8 = vmmov %vm3061_vm0 }
 0x16b   : > { %754 = vmatpush.msrb.mxu2 %v732_v24 }
 0x16c   : > { %v792_v25 = vpop.permute.xlu1 %791 }
 0x16d   : > { %v2136_v26 = vpop.permute.xlu0 %2135 }
 0x16e   : > { %v2138_v31 = vunpack.i.h.bf16 %v2136_v26  ;;  %v2137_v32 = vunpack.i.l.bf16 %v2136_v26 }
 0x170   : > { %1976 = vmatmul.msk.f32.vlgmr.msra.gmra.mxu2 %vm3059_vm11, %v1975_v21  ;;  %v798_v34 = vsel %vm797_vm9, %v792_v25, %v2137_v32  ;;  %v799_v35 = vsel %vm797_vm9, %v2137_v32, %v2138_v31  ;;  %vm3069_vm9 = vmmov %vm3061_vm0  ;;  %v554_v21 = vadd.f32 1.0, %v2348_v22 }
 0x171   : > { %820 = vmatpush.msra.mxu2 %v798_v34  ;;  %840 = vmatpush.msra.mxu3 %v799_v35  ;;  %vm3071_vm11 = vmmov %vm3061_vm0 }
 0x172   : > { %1980 = vmatmul.msk.f32.vlgmr.msrb.gmra.mxu3 %vm3060_vm12, %v1978_v33  ;;  %vm541_vm12 = vcmp.ge.f32.partialorder %v539_v0, 0.0 }
 0x173   : > { %967 = vmatpush.msrb.mxu3 %v926_v38 }
 0x174   : > { %v2146_v43 = vpop.permute.xlu1 %2145 }
 0x175   : > { %v2148_v44 = vunpack.i.h.bf16 %v2146_v43  ;;  %v2147_v45 = vunpack.i.l.bf16 %v2146_v43  ;;  %v919_v47 = vpop.permute.xlu0 %918 }
 0x176   : > { %v925_v50 = vsel %vm924_vm10, %v919_v47, %v2142_v30  ;;  %vm3070_vm10 = vmmov %vm3061_vm0  ;;  %v579_v30 = vadd.f32 1.0, %v2334_v16 }
 0x177   : > { %v992_v51 = vsel %vm990_vm13, %v2147_v45, %v2148_v44 }
 0x178   : > { %1979 = vmatmul.msk.f32.vlgmr.msrb.gmra.mxu2 %vm3061_vm0, %v1978_v33  ;;  %1033 = vmatpush.msra.mxu1 %v992_v51 }
 0x179   : > { %947 = vmatpush.msrb.mxu2 %v925_v50  ;;  %1992 = vmatmul.msk.f32.vlgmr.msra.gmra.mxu1 %vm3063_vm2, %v1990_v53  ;;  %vm540_vm2 = vcmp.ge.f32.partialorder %v538_v6, 0.0  ;;  %v578_v50 = vadd.f32 1.0, %v2332_v15 }
 0x17a   : > { %1165 = vmatpush.msrb.mxu1 %v1124_v39  ;;  %1983 = vmatmul.msk.f32.vlgmr.msra.gmra.mxu3 %vm3062_vm1, %v1981_v52 }
 0x17b   : > { %1099 = vmatpush.msra.mxu3 %v1058_v54 }
 0x17c   : > { %v1051_v55 = vpop.permute.xlu1 %1050 }
 0x17d   : > { %v985_v40 = vpop.permute.xlu0 %984  ;;  %v1057_v56 = vsel %vm1056_vm15, %v1051_v55, %v2152_v49  ;;  %vm567_vm15 = vcmp.le.f32.partialorder %v563_v1, 15.0 }
 0x17e   : > { %v991_v57 = vsel %vm990_vm13, %v985_v40, %v2147_v45  ;;  %vm543_vm13 = vcmp.le.f32.partialorder %v539_v0, 15.0 }
 0x17f   : > { %1013 = vmatpush.msra.mxu0 %v991_v57  ;;  %vm2478_vm0 = vmand %vm541_vm12, %vm543_vm13  ;;  %vm559_vm12 = vcmp.le.f32.partialorder %v555_v10, 15.0 }
 0x180   : > { %1982 = vmatmul.msk.f32.vlgmr.msra.gmra.mxu2 %vm3064_vm3, %v1981_v52  ;;  %1991 = vmatmul.msk.f32.vlgmr.msra.gmra.mxu0 %vm3065_vm5, %v1990_v53  ;;  %vm542_vm3 = vcmp.le.f32.partialorder %v538_v6, 15.0  ;;  %vm549_vm5 = vcmp.ge.f32.partialorder %v2350_v23, 0.0 }
 0x181   : > { %1079 = vmatpush.msra.mxu2 %v1057_v56  ;;  %1998 = vmatmul.msk.f32.vlgmr.msrb.gmra.mxu1 %vm3067_vm7, %v1996_v59 }
 0x182   : > { %1989 = vmatmul.msk.f32.vlgmr.msrb.gmra.mxu3 %vm3066_vm6, %v1987_v58  ;;  %vm551_vm6 = vcmp.le.f32.partialorder %v2350_v23, 15.0 }
 0x183   : > { %vm2498_vm13 = vmand %vm549_vm5, %vm551_vm6  ;;  %vm548_vm5 = vcmp.ge.f32.partialorder %v2348_v22, 0.0  ;;  %vm550_vm6 = vcmp.le.f32.partialorder %v2348_v22, 15.0 }
 0x185   : > { %v1117_v60 = vpop.permute.xlu0 %1116 }
 0x186   : > { %v1123_v61 = vsel %vm1122_vm14, %v1117_v60, %v2157_v42  ;;  %vm565_vm14 = vcmp.ge.f32.partialorder %v563_v1, 0.0  ;;  %v877_v42 = vpop.f32.mrf.mxu0 }
 0x187   : > { %1145 = vmatpush.msrb.mxu0 %v1123_v61  ;;  %vm2483_vm1 = vmand %vm565_vm14, %vm567_vm15  ;;  %vm573_vm15 = vcmp.ge.f32.partialorder %v2334_v16, 0.0 }
 0x188   : > { %1988 = vmatmul.msk.f32.vlgmr.msrb.gmra.mxu2 %vm3068_vm8, %v1987_v58  ;;  %1997 = vmatmul.msk.f32.vlgmr.msrb.gmra.mxu0 %vm3069_vm9, %v1996_v59  ;;  %vm648_vm7 = vmand %vm2483_vm1, %vm2478_vm0  ;;  %vm564_vm8 = vcmp.ge.f32.partialorder %v562_v8, 0.0  ;;  %vm566_vm9 = vcmp.le.f32.partialorder %v562_v8, 15.0 }
 0x189   : > { %vm2502_vm14 = vmand %vm564_vm8, %vm566_vm9 }
 0x18a   : > { %1995 = vmatmul.msk.f32.vlgmr.msra.gmra.mxu3 %vm3070_vm10, %v1993_v62  ;;  %vm2494_vm10 = vmand %vm540_vm2, %vm542_vm3 }
 0x18b   : > { %v3077_v12 = vsel %vm2494_vm10, 4294967295, %v3076_v12  ;;  %vm714_vm3 = vmand %vm2483_vm1, %vm2498_vm13  ;;  %vm574_vm10 = vcmp.le.f32.partialorder %v2332_v15, 15.0 }
 0x18c   : > { %vm2518_vm8 = vmand %vm573_vm15, %vm575_vm4  ;;  %vm556_vm15 = vcmp.ge.f32.partialorder %v554_v21, 0.0 }
 0x18d   : > { %vm846_vm4 = vmand %vm2518_vm8, %vm2478_vm0 }
 0x190   : > { %1994 = vmatmul.msk.f32.vlgmr.msra.gmra.mxu2 %vm3071_vm11, %v1993_v62  ;;  %vm557_vm11 = vcmp.ge.f32.partialorder %v555_v10, 0.0 }
 0x191   : > { %vm2508_vm2 = vmand %vm557_vm11, %vm559_vm12  ;;  %vm572_vm12 = vcmp.ge.f32.partialorder %v2332_v15, 0.0 }
 0x192   : > { %vm780_vm9 = vmand %vm2483_vm1, %vm2508_vm2 }
 0x193   : > { %vm2527_vm11 = vmand %vm548_vm5, %vm550_vm6  ;;  %vm583_vm6 = vcmp.le.f32.partialorder %v579_v30, 15.0 }
 0x194   : > { %vm901_vm1 = vmand %vm2518_vm8, %vm2498_vm13 }
 0x195   : > { %v907_v41 = vsel %vm901_vm1, %v897_v17, 0.0 }
 0x1e5   : > { %v644_v63 = vpop.f32.mrf.mxu3 }
 0x1e6   : > { %v654_v22 = vsel %vm648_vm7, %v644_v63, 0.0  ;;  %vm581_vm7 = vcmp.ge.f32.partialorder %v579_v30, 0.0 }
 0x1e7   : > { %vm2563_vm5 = vmand %vm581_vm7, %vm583_vm6 }
 0x1e8   : > { %vm1171_vm6 = vmand %vm2563_vm5, %vm2508_vm2 }
 0x1eb   : > { %v2475_v4 = vpop.f32.mrf.mxu2 }
 0x1ed   : > { %v710_v5 = vpop.f32.mrf.mxu3 }
 0x1ee   : > { %v720_v25 = vsel %vm714_vm3, %v710_v5, 0.0  ;;  %vm558_vm3 = vcmp.le.f32.partialorder %v554_v21, 15.0 }
 0x1ef   : > { %v722_v32 = vadd.f32 %v720_v25, %v654_v22 }
 0x1f3   : > { %v690_v11 = vpop.f32.mrf.mxu2 }
 0x1f5   : > { %v776_v13 = vpop.f32.mrf.mxu3 }
 0x1f6   : > { %v786_v31 = vsel %vm780_vm9, %v776_v13, 0.0  ;;  %v1035_v34 = vpop.f32.mrf.mxu1  ;;  %vm2553_vm9 = vmand %vm556_vm15, %vm558_vm3 }
 0x1f7   : > { %v788_v33 = vadd.f32 %v786_v31, %v722_v32  ;;  %vm2567_vm15 = vmand %vm572_vm12, %vm574_vm10  ;;  %vm3095_vm12 = vnez %v3077_v12  ;;  %v2641_v31 = vadd.s32 8, %v2360_v36 }
 0x1f8   : > { %vm779_vm3 = vmand %vm2502_vm14, %vm2553_vm9 }
 0x1f9   : > { %vm1039_vm10 = vmand %vm2563_vm5, %vm2478_vm0 }
 0x1fa   : > { %vm845_vm1 = vmand %vm2567_vm15, %vm3095_vm12  ;;  %v1045_v54 = vsel %vm1039_vm10, %v1035_v34, 0.0 }
 0x1fb   : > { %v756_v24 = vpop.f32.mrf.mxu2  ;;  %vm3096_vm7 = vmand %vm2502_vm14, %vm3095_vm12 }
 0x1fc   : > { %v653_v51 = vsel %vm3096_vm7, %v2475_v4, 0.0  ;;  %v785_v52 = vsel %vm779_vm3, %v756_v24, 0.0  ;;  %vm1105_vm0 = vmand %vm2563_vm5, %vm2498_vm13  ;;  %vm582_vm3 = vcmp.le.f32.partialorder %v578_v50, 15.0 }
 0x1fd   : > { %v842_v27 = vpop.f32.mrf.mxu3  ;;  %vm972_vm13 = vmand %vm2567_vm15, %vm2553_vm9  ;;  %v1015_v60 = vpop.f32.mrf.mxu0 }
 0x1fe   : > { %v852_v16 = vsel %vm846_vm4, %v842_v27, 0.0  ;;  %vm973_vm4 = vmand %vm2518_vm8, %vm2508_vm2  ;;  %v1167_v56 = vpop.f32.mrf.mxu1 }
 0x1ff   : > { %v854_v37 = vadd.f32 %v852_v16, %v788_v33  ;;  %vm3094_vm8 = vmand %vm2502_vm14, %vm2527_vm11  ;;  %v1177_v62 = vsel %vm1171_vm6, %v1167_v56, 0.0 }
 0x200   : > { %v719_v48 = vsel %vm3094_vm8, %v690_v11, 0.0  ;;  %vm900_vm14 = vmand %vm2567_vm15, %vm2527_vm11 }
 0x201   : > { %v909_v49 = vadd.f32 %v907_v41, %v854_v37  ;;  %v721_v39 = vadd.f32 %v719_v48, %v653_v51  ;;  %v906_v63 = vsel %vm900_vm14, %v877_v42, 0.0 }
 0x203   : > { %v822_v38 = vpop.f32.mrf.mxu2  ;;  %v787_v15 = vadd.f32 %v785_v52, %v721_v39 }
 0x204   : > { %v851_v55 = vsel %vm845_vm1, %v822_v38, 0.0 }
 0x205   : > { %v969_v45 = vpop.f32.mrf.mxu3  ;;  %v853_v59 = vadd.f32 %v851_v55, %v787_v15  ;;  %v1147_v12 = vpop.f32.mrf.mxu0 }
 0x206   : > { %v979_v47 = vsel %vm973_vm4, %v969_v45, 0.0  ;;  %vm580_vm4 = vcmp.ge.f32.partialorder %v578_v50, 0.0 }
 0x207   : > { %v981_v53 = vadd.f32 %v979_v47, %v909_v49  ;;  %vm2611_vm2 = vmand %vm580_vm4, %vm582_vm3  ;;  %v908_v6 = vadd.f32 %v906_v63, %v853_v59 }
 0x208   : > { %vm1038_vm5 = vmand %vm2611_vm2, %vm3095_vm12 }
 0x209   : > { %v1047_v57 = vadd.f32 %v1045_v54, %v981_v53  ;;  %vm1104_vm15 = vmand %vm2611_vm2, %vm2527_vm11  ;;  %v1044_v10 = vsel %vm1038_vm5, %v1015_v60, 0.0 }
 0x20a   : > { %vm1170_vm8 = vmand %vm2611_vm2, %vm2553_vm9 }
 0x20b   : > { %v949_v40 = vpop.f32.mrf.mxu2  ;;  %v1176_v21 = vsel %vm1170_vm8, %v1147_v12, 0.0 }
 0x20c   : > { %v978_v4 = vsel %vm972_vm13, %v949_v40, 0.0 }
 0x20d   : > { %v1101_v58 = vpop.f32.mrf.mxu3  ;;  %v980_v8 = vadd.f32 %v978_v4, %v908_v6 }
 0x20e   : > { %v1111_v61 = vsel %vm1105_vm0, %v1101_v58, 0.0 }
 0x20f   : > { %v1113_v1 = vadd.f32 %v1111_v61, %v1047_v57  ;;  %v1046_v23 = vadd.f32 %v1044_v10, %v980_v8 }
 0x211   : > { %v2615_v5 = vadd.f32 %v1177_v62, %v1113_v1 }
 0x213   : > { %v1219_v7 = vmul.f32 0.0625, %v2615_v5  ;;  %v1081_v9 = vpop.f32.mrf.mxu2 }
 0x214   : > { %v1110_v14 = vsel %vm1104_vm15, %v1081_v9, 0.0 }
 0x215   : > { %v1223_v11 = vadd.f32 %v2388_v3, %v1219_v7  ;;  %v1221_v17 = vadd.f32 %v2356_v29, %v1219_v7  ;;  %v1112_v20 = vadd.f32 %v1110_v14, %v1046_v23 }
 0x217   : > { %v2627_v13 = vadd.f32 1.0, %v1223_v11  ;;  %v1225_v25 = vadd.f32 1.0, %v1221_v17  ;;  %v2635_v26 = vadd.f32 %v1176_v21, %v1112_v20 }
 0x219   : > { %v1466_v18 = vmul.f32 7.5, %v2627_v13  ;;  %v1464_v27 = vmul.f32 7.5, %v1225_v25  ;;  %v1218_v22 = vmul.f32 0.0625, %v2635_v26  ;;  %v1227_v48 = vmul.f32 3.5, %v1225_v25 }
 0x21b   : > { %v1539_v24 = vfloor.f32 %v1466_v18  ;;  %v1468_v16 = vfloor.f32 %v1464_v27  ;;  %v1220_v34 = vadd.f32 %v2354_v28, %v1218_v22  ;;  %v1222_v35 = vadd.f32 %v2386_v2, %v1218_v22 }
 0x21c   : > { %v1233_v55 = vfloor.f32 %v1227_v48 }
 0x21d   : > { %v1541_v3 = vsub.f32 %v1466_v18, %v1539_v24  ;;  %v2637_v30 = vcvt.f32.s32 %v1539_v24  ;;  %v2065_v38 = vcvt.f32.s32 %v1468_v16  ;;  %v1224_v45 = vadd.f32 1.0, %v1220_v34 }
 0x21e   : > { %v2663_v47 = vadd.f32 1.0, %v1222_v35  ;;  %v1470_v57 = vsub.f32 %v1464_v27, %v1468_v16  ;;  %v2690_v62 = vsub.f32 %v1227_v48, %v1233_v55  ;;  %v2696_v7 = vcvt.f32.s32 %v1233_v55 }
 0x21f   : > { %v1543_v32 = vsub.f32 1.0, %v1541_v3  ;;  %v2644_v29 = vadd.s32 1, %v2637_v30  ;;  %vm1549_vm11 = vcmp.ge.s32.totalorder %v2637_v30, 0  ;;  %vm1551_vm9 = vcmp.le.s32.totalorder %v2637_v30, 15 }
 0x220   : > { %vm1553_vm10 = vmand %vm1549_vm11, %vm1551_vm9  ;;  %v1565_v33 = vperm.slane %v2637_v30, 3  ;;  %v2671_v50 = vadd.s32 1, %v2065_v38  ;;  %v1463_v52 = vmul.f32 7.5, %v1224_v45  ;;  %v1465_v53 = vmul.f32 7.5, %v2663_v47 }
 0x221   : > { %vm1555_vm12 = vcmp.ge.s32.totalorder %v2644_v29, 0  ;;  %vm1557_vm1 = vcmp.le.s32.totalorder %v2644_v29, 15  ;;  %v2653_v37 = vsel %vm1553_vm10, %v1543_v32, 0.0  ;;  %v1585_v28 = vperm.slane %v2644_v29, 3 }
 0x222   : > { %vm1559_vm7 = vmand %vm1555_vm12, %vm1557_vm1  ;;  %vm1569_vm0 = vcmp.eq.s32.totalorder %v2641_v31, %v1565_v33  ;;  %v1579_v43 = vperm.slane %v2653_v37, 3  ;;  %v1467_v54 = vfloor.f32 %v1463_v52  ;;  %v1538_v40 = vfloor.f32 %v1465_v53 }
 0x223   : > { %v1563_v41 = vsel %vm1559_vm7, %v1541_v3, 0.0  ;;  %v2022_v42 = vsel %vm1569_vm0, 1.0, %v2236_v46  ;;  %vm1589_vm6 = vcmp.eq.s32.totalorder %v2641_v31, %v1585_v28  ;;  %vm1484_vm14 = vcmp.ge.s32.totalorder %v2671_v50, 0 }
 0x224   : > { %v2661_v44 = vperm.slane %v1563_v41, 3  ;;  %v1583_v2 = vmul.f32 %v2022_v42, %v1579_v43  ;;  %v2026_v49 = vsel %vm1589_vm6, 1.0, %v2236_v46  ;;  %vm1486_vm4 = vcmp.le.s32.totalorder %v2671_v50, 15 }
 0x225   : > { %v1226_v56 = vmul.f32 3.5, %v1224_v45  ;;  %v2679_v15 = vcvt.f32.s32 %v1467_v54  ;;  %v1540_v58 = vsub.f32 %v1465_v53, %v1538_v40  ;;  %vm2681_vm3 = vmand %vm1484_vm14, %vm1486_vm4  ;;  %v2688_v61 = vcvt.f32.s32 %v1538_v40  ;;  %v270_v40 = vld [vmem:[%s2748_s7] sm:$0xff] }
 0x226   : > { %v1603_v51 = vmul.f32 %v2026_v49, %v2661_v44  ;;  %vm1478_vm13 = vcmp.ge.s32.totalorder %v2065_v38, 0  ;;  %vm1480_vm2 = vcmp.le.s32.totalorder %v2065_v38, 15  ;;  %v1472_v0 = vsub.f32 1.0, %v1470_v57 }
 0x227   : > { %v2686_v60 = vadd.s32 1, %v2679_v15  ;;  %v1232_v63 = vfloor.f32 %v1226_v56  ;;  %v1492_v1 = vsel %vm2681_vm3, %v1470_v57, 0.0  ;;  %v1542_v4 = vsub.f32 1.0, %v1540_v58  ;;  %vm1482_vm8 = vmand %vm1478_vm13, %vm1480_vm2 }
 0x228   : > { %v2675_v39 = vadd.f32 %v1603_v51, %v1583_v2  ;;  %v1495_v6 = vperm.slane %v2065_v38, 2  ;;  %v2699_v8 = vadd.s32 1, %v2688_v61  ;;  %v1237_v9 = vsub.f32 1.0, %v2690_v62 }
 0x229   : > { %vm1483_vm5 = vcmp.ge.s32.totalorder %v2686_v60, 0  ;;  %vm1485_vm15 = vcmp.le.s32.totalorder %v2686_v60, 15  ;;  %v2702_v10 = vsub.f32 %v1226_v56, %v1232_v63  ;;  %vm1548_vm9 = vcmp.ge.s32.totalorder %v2688_v61, 0  ;;  %v271_v56 = vld [vmem:[%s2748_s7 + $0x8] sm:$0xff] }
 0x22a   : > { %vm2704_vm11 = vmand %vm1483_vm5, %vm1485_vm15  ;;  %vm1550_vm10 = vcmp.le.s32.totalorder %v2688_v61, 15  ;;  %v1529_v14 = vperm.slane %v1492_v1, 2  ;;  %vm1554_vm1 = vcmp.ge.s32.totalorder %v2699_v8, 0  ;;  %vm1556_vm7 = vcmp.le.s32.totalorder %v2699_v8, 15 }
 0x22b   : > { %vm1552_vm12 = vmand %vm1548_vm9, %vm1550_vm10  ;;  %v1490_v23 = vsel %vm1482_vm8, %v1472_v0, 0.0  ;;  %v1564_v18 = vperm.slane %v2688_v61, 3  ;;  %v1584_v20 = vperm.slane %v2699_v8, 3  ;;  %vm1497_vm6 = vcmp.eq.s32.totalorder %v2360_v36, %v1495_v6 }
 0x22c   : > { %vm2712_vm0 = vmand %vm1554_vm1, %vm1556_vm7  ;;  %v2716_v17 = vsel %vm1552_vm12, %v1542_v4, 0.0  ;;  %v1469_v21 = vsub.f32 %v1463_v52, %v1467_v54  ;;  %vm1499_vm14 = vcmp.eq.s32.totalorder %v2641_v31, %v1495_v6  ;;  %v1236_v3 = vsub.f32 1.0, %v2702_v10 }
 0x22d   : > { %v1562_v24 = vsel %vm2712_vm0, %v1540_v58, 0.0  ;;  %v1578_v25 = vperm.slane %v2716_v17, 3  ;;  %v2727_v27 = vcvt.f32.s32 %v1232_v63  ;;  %vm1568_vm4 = vcmp.eq.s32.totalorder %v2641_v31, %v1564_v18 }
 0x22e   : > { %vm1588_vm3 = vcmp.eq.s32.totalorder %v2641_v31, %v1584_v20  ;;  %v1491_v22 = vsel %vm2704_vm11, %v1469_v21, 0.0  ;;  %v2021_v32 = vsel %vm1568_vm4, 1.0, %v2236_v46  ;;  %v2012_v34 = vsel %vm1497_vm6, 1.0, %v2236_v46 }
 0x22f   : > { %v2025_v16 = vsel %vm1588_vm3, 1.0, %v2236_v46  ;;  %v1582_v35 = vmul.f32 %v2021_v32, %v1578_v25  ;;  %v2742_v38 = vperm.slane %v1562_v24, 3  ;;  %v2014_v41 = vsel %vm1499_vm14, 1.0, %v2236_v46 }
 0x230   : > { %v1509_v42 = vperm.slane %v1490_v23, 2  ;;  %v1515_v45 = vperm.slane %v2671_v50, 2  ;;  %v1241_v2 = vadd.s32 1, %v2696_v7  ;;  %vm1243_vm13 = vcmp.ge.s32.totalorder %v2696_v7, 0 }
 0x231   : > { %vm1245_vm2 = vcmp.le.s32.totalorder %v2696_v7, 7  ;;  %v1471_v48 = vsub.f32 1.0, %v1469_v21  ;;  %v1528_v49 = vperm.slane %v1491_v22, 2  ;;  %v1602_v51 = vmul.f32 %v2025_v16, %v2742_v38 }
 0x232   : > { %v1511_v52 = vmul.f32 %v2012_v34, %v1509_v42  ;;  %vm1247_vm5 = vmand %vm1243_vm13, %vm1245_vm2  ;;  %vm1517_vm15 = vcmp.eq.s32.totalorder %v2360_v36, %v1515_v45  ;;  %vm1519_vm8 = vcmp.eq.s32.totalorder %v2641_v31, %v1515_v45  ;;  %vm1249_vm11 = vcmp.ge.s32.totalorder %v1241_v2, 0 }
 0x233   : > { %vm1251_vm9 = vcmp.le.s32.totalorder %v1241_v2, 7  ;;  %v2757_v50 = vadd.f32 %v1602_v51, %v1582_v35  ;;  %v1513_v53 = vmul.f32 %v2014_v41, %v1509_v42  ;;  %v2016_v54 = vsel %vm1517_vm15, 1.0, %v2236_v46 }
 0x234   : > { %v2018_v55 = vsel %vm1519_vm8, 1.0, %v2236_v46  ;;  %vm1253_vm10 = vmand %vm1249_vm11, %vm1251_vm9  ;;  %v1531_v57 = vmul.f32 %v2016_v54, %v1529_v14  ;;  %v1255_v59 = vsel %vm1247_vm5, %v1237_v9, 0.0  ;;  %v1259_v0 = vperm.slane %v2696_v7, 0 }
 0x235   : > { %v1533_v58 = vmul.f32 %v2018_v55, %v1529_v14  ;;  %v1257_v63 = vsel %vm1253_vm10, %v2690_v62, 0.0  ;;  %v1267_v1 = vperm.slane %v1255_v59, 0  ;;  %v1271_v4 = vperm.slane %v1241_v2, 0 }
 0x236   : > { %v1279_v6 = vperm.slane %v1257_v63, 0  ;;  %v1535_v11 = vadd.f32 %v1531_v57, %v1511_v52  ;;  %vm1346_vm12 = vcmask 1043456   ;;  %v1608_v12 = vpack.c.bf16 %v271_v56, %v270_v40 }
 0x237   : > { %v1537_v23 = vadd.f32 %v1533_v58, %v1513_v53  ;;  %vm1261_vm1 = vcmp.eq.s32.totalorder %v2360_v36, %v1259_v0  ;;  %vm1273_vm7 = vcmp.eq.s32.totalorder %v2360_v36, %v1271_v4  ;;  %vm1477_vm0 = vcmp.ge.s32.totalorder %v2679_v15, 0  ;;  %v273_v4 = vld [vmem:[%s2748_s7 + $0x18] sm:$0xff] }
 0x238   : > { %vm1479_vm6 = vcmp.le.s32.totalorder %v2679_v15, 15  ;;  %v2000_v62 = vsel %vm1261_vm1, 1.0, %v2236_v46  ;;  %v2002_v7 = vsel %vm1273_vm7, 1.0, %v2236_v46  ;;  %v1494_v14 = vperm.slane %v2679_v15, 2 }
 0x239   : > { %v1613_v9 = vpack.c.bf16 %v1537_v23, %v1535_v11  ;;  %vm1481_vm14 = vmand %vm1477_vm0, %vm1479_vm6  ;;  %v1269_v21 = vmul.f32 %v2000_v62, %v1267_v1  ;;  %v1281_v24 = vmul.f32 %v2002_v7, %v1279_v6  ;;  %v1514_v32 = vperm.slane %v2686_v60, 2  ;;  %v272_v1 = vld [vmem:[%s2748_s7 + $0x10] sm:$0xff]  ;;  %v2170_v62 = vld [vmem:[%s2330_s9 + $0x18] sm:$0xff] }
 0x23a   : > { %v1489_v22 = vsel %vm1481_vm14, %v1471_v48, 0.0  ;;  %vm1496_vm4 = vcmp.eq.s32.totalorder %v2360_v36, %v1494_v14  ;;  %vm1498_vm3 = vcmp.eq.s32.totalorder %v2641_v31, %v1494_v14  ;;  %v1240_v34 = vadd.s32 1, %v2727_v27  ;;  %v274_v14 = vld [vmem:[%s2748_s7 + $0x20] sm:$0xff] }
 0x23b   : > { %1662 = vmatpush.bf16.msra.mxu1 %v1613_v9  ;;  %v1508_v16 = vperm.slane %v1489_v22, 2  ;;  %v1283_v35 = vadd.f32 %v1281_v24, %v1269_v21  ;;  %v2011_v41 = vsel %vm1496_vm4, 1.0, %v2236_v46  ;;  %v2013_v42 = vsel %vm1498_vm3, 1.0, %v2236_v46  ;;  %v2169_v9 = vld [vmem:[%s2330_s9 + $0x10] sm:$0xff]  ;;  %v275_v21 = vld [vmem:[%s2748_s7 + $0x28] sm:$0xff]  ;;  %v277_v22 = vld [vmem:[%s2748_s7 + $0x38] sm:$0xff] }
 0x23c   : > { %vm1516_vm13 = vcmp.eq.s32.totalorder %v2360_v36, %v1514_v32  ;;  %vm1518_vm2 = vcmp.eq.s32.totalorder %v2641_v31, %v1514_v32  ;;  %vm3105_vm5 = vcmask 130048   ;;  %vm1242_vm15 = vcmp.ge.s32.totalorder %v2727_v27, 0  ;;  %v276_v24 = vld [vmem:[%s2748_s7 + $0x30] sm:$0xff]  ;;  %s218_s9 = sand.u32 1, %s2225_s16  }
 0x23d   : > { %v1510_v15 = vmul.f32 %v2011_v41, %v1508_v16  ;;  %v1512_v45 = vmul.f32 %v2013_v42, %v1508_v16  ;;  %v2015_v60 = vsel %vm1516_vm13, 1.0, %v2236_v46  ;;  %v1339_v2 = vpack.c.bf16 %v1283_v35, %v1283_v35  ;;  %vm3107_vm14 = vmmov %vm3105_vm5  ;;  %s1946_s8 = sshll.u32 %s218_s9, 3  ;;  %s1843_s19 = scalar_lea.sflag [#allocation4], %s218_s9 }
 0x23e   : > { %2031 = vmatmul.msk.bf16.vlgmr.msra.gmra.mxu1 %vm3105_vm5, %v1608_v12  ;;  %v2017_v48 = vsel %vm1518_vm2, 1.0, %v2236_v46  ;;  %v1530_v51 = vmul.f32 %v2015_v60, %v1528_v49  ;;  %vm1244_vm8 = vcmp.le.s32.totalorder %v2727_v27, 7  ;;  %vm1248_vm11 = vcmp.ge.s32.totalorder %v1240_v34, 0  ;;  %vm3108_vm4 = vmmov %vm3105_vm5  ;;  %s220_s14 = scalar_lea.vmem [#allocation3], %s1946_s8 }
 0x23f   : > { %v1532_v52 = vmul.f32 %v2017_v48, %v1528_v49  ;;  %vm1250_vm9 = vcmp.le.s32.totalorder %v1240_v34, 7  ;;  %v1351_v53 = vsel %vm1346_vm12, %v1339_v2, 0  ;;  %vm1246_vm10 = vmand %vm1242_vm15, %vm1244_vm8  ;;  %v1258_v31 = vperm.slane %v2727_v27, 0  ;;  %s1856_s20 = sshll.u32 %s220_s14, 4  ;;  %s1857_s20 = int_to_ptr.vmem [resolvable:$true] %s1856_s20 }
 0x240   : > { %v1534_v54 = vadd.f32 %v1530_v51, %v1510_v15  ;;  %v1270_v55 = vperm.slane %v1240_v34, 0  ;;  %1379 = vmatpush.bf16.msrb.mxu3 %v1351_v53  ;;  %vm1252_vm1 = vmand %vm1248_vm11, %vm1250_vm9  ;;  %v1254_v56 = vsel %vm1246_vm10, %v1236_v3, 0.0  ;;  %vm3106_vm6 = vcmask 64512  }
 0x241   : > { %v1536_v40 = vadd.f32 %v1532_v52, %v1512_v45  ;;  %v1256_v49 = vsel %vm1252_vm1, %v2702_v10, 0.0  ;;  %vm1260_vm7 = vcmp.eq.s32.totalorder %v2360_v36, %v1258_v31  ;;  %v1266_v57 = vperm.slane %v1254_v56, 0  ;;  %vm3109_vm3 = vmmov %vm3106_vm6 }
 0x242   : > { %vm1272_vm0 = vcmp.eq.s32.totalorder %v2360_v36, %v1270_v55  ;;  %v1999_v59 = vsel %vm1260_vm7, 1.0, %v2236_v46  ;;  %v1278_v63 = vperm.slane %v1256_v49, 0  ;;  %v1609_v11 = vpack.c.bf16 %v273_v4, %v272_v1  ;;  %vm3110_vm13 = vmmov %vm3109_vm3 }
 0x243   : > { %v1612_v58 = vpack.c.bf16 %v1536_v40, %v1534_v54  ;;  %v2001_v27 = vsel %vm1272_vm0, 1.0, %v2236_v46  ;;  %2009 = vmatmul.msk.bf16.vlgmr.msrb.gmra.mxu3 %vm3106_vm6, %v2344_v19  ;;  %v1268_v3 = vmul.f32 %v1999_v59, %v1266_v57  ;;  %v1337_v7 = vpack.c.bf16 %v2170_v62, %v2169_v9  ;;  %vm3111_vm2 = vmmov %vm3108_vm4 }
 0x244   : > { %v1280_v10 = vmul.f32 %v2001_v27, %v1278_v63  ;;  %vm3112_vm5 = vmmov %vm3111_vm2  ;;  %v1611_v32 = vpack.c.bf16 %v277_v22, %v276_v24  ;;  %vm1587_vm10 = vcmp.eq.s32.totalorder %v2360_v36, %v1585_v28  ;;  %v1231_v16 = vmul.f32 3.5, %v2627_v13 }
 0x245   : > { %1633 = vmatpush.bf16.msra.mxu0 %v1612_v58  ;;  %vm3113_vm15 = vmmov %vm3109_vm3  ;;  %vm1567_vm1 = vcmp.eq.s32.totalorder %v2360_v36, %v1565_v33  ;;  %v2024_v35 = vsel %vm1587_vm10, 1.0, %v2236_v46  ;;  %v1230_v15 = vmul.f32 3.5, %v2663_v47  ;;  %v1180_v29 = vsub.f32 0.0, %v2635_v26 }
 0x246   : > { %v1282_v0 = vadd.f32 %v1280_v10, %v1268_v3  ;;  %vm3114_vm8 = vmmov %vm3111_vm2  ;;  %v1285_v41 = vfloor.f32 %v1231_v16  ;;  %v2020_v42 = vsel %vm1567_vm1, 1.0, %v2236_v46  ;;  %vm1586_vm7 = vcmp.eq.s32.totalorder %v2360_v36, %v1584_v20 }
 0x247   : > { %vm3115_vm11 = vmmov %vm3111_vm2  ;;  %v1581_v13 = vmul.f32 %v2020_v42, %v1579_v43  ;;  %v1284_v30 = vfloor.f32 %v1230_v15  ;;  %v1182_v60 = vmul.f32 1.442695, %v1180_v29  ;;  %vm1566_vm0 = vcmp.eq.s32.totalorder %v2360_v36, %v1564_v18 }
 0x248   : > { %2027 = vmatmul.msk.bf16.vlgmr.msra.gmra.mxu0 %vm3107_vm14, %v1608_v12  ;;  %v1338_v6 = vpack.c.bf16 %v1282_v0, %v1282_v0  ;;  %v1610_v12 = vpack.c.bf16 %v275_v21, %v274_v14  ;;  %vm3116_vm9 = vmmov %vm3111_vm2  ;;  %v2061_v28 = vcvt.f32.s32 %v1285_v41  ;;  %v2023_v26 = vsel %vm1586_vm7, 1.0, %v2236_v46 }
 0x249   : > { %v2840_v43 = vcvt.f32.s32 %v1284_v30  ;;  %v2019_v2 = vsel %vm1566_vm0, 1.0, %v2236_v46  ;;  %v1600_v20 = vmul.f32 %v2023_v26, %v2742_v38  ;;  %v1286_v59 = vsub.f32 %v1230_v15, %v1284_v30 }
 0x24a   : > { %v1348_v23 = vsel %vm1346_vm12, %v1338_v6, 0  ;;  %v1293_v37 = vadd.s32 1, %v2061_v28  ;;  %vm1295_vm6 = vcmp.ge.s32.totalorder %v2061_v28, 0  ;;  %vm1297_vm14 = vcmp.le.s32.totalorder %v2061_v28, 7 }
 0x24b   : > { %1360 = vmatpush.bf16.msrb.mxu2 %v1348_v23  ;;  %v1292_v51 = vadd.s32 1, %v2840_v43  ;;  %v1580_v52 = vmul.f32 %v2019_v2, %v1578_v25  ;;  %v1311_v54 = vperm.slane %v2061_v28, 1  ;;  %vm1296_vm10 = vcmp.le.s32.totalorder %v2840_v43, 7 }
 0x24c   : > { %v1323_v31 = vperm.slane %v1293_v37, 1  ;;  %v1288_v23 = vsub.f32 1.0, %v1286_v59  ;;  %v1310_v62 = vperm.slane %v2840_v43, 1 }
 0x24d   : > { %v2850_v55 = vadd.f32 %v1600_v20, %v1580_v52 }
 0x24e   : > { %2032 = vmatmul.msk.bf16.gmra.mxu1 %vm3108_vm4, %v1609_v11  ;;  %2007 = vmatmul.msk.bf16.vlgmr.msrb.gmra.mxu2 %vm3109_vm3, %v2344_v19  ;;  %v1181_v19 = vsub.f32 0.0, %v2615_v5  ;;  %v1601_v5 = vmul.f32 %v2024_v35, %v2661_v44  ;;  %v1287_v44 = vsub.f32 %v1231_v16, %v1285_v41  ;;  %vm1301_vm4 = vcmp.ge.s32.totalorder %v1293_v37, 0 }
 0x24f   : > { %vm1303_vm3 = vcmp.le.s32.totalorder %v1293_v37, 7  ;;  %v1690_v4 = vperm.slane %v2850_v55, 1  ;;  %v1684_v28 = vperm.slane %v2850_v55, 0  ;;  %vm2905_vm0 = vcmp.eq.s32.totalorder %v2360_v36, %v1310_v62 }
 0x250   : > { %v1184_v34 = vmul.f32 1.442695, %v1181_v19  ;;  %v2834_v45 = vadd.f32 %v1601_v5, %v1581_v13  ;;  %v1289_v61 = vsub.f32 1.0, %v1287_v44 }
 0x252   : > { %2161 = vpow2.f32 %v1184_v34  ;;  %v1691_v8 = vperm.slane %v2834_v45, 1  ;;  %v1685_v56 = vperm.slane %v2834_v45, 0  ;;  %v1703_v57 = vperm.slane %v2834_v45, 2 }
 0x253   : > { %2010 = vmatmul.msk.bf16.gmra.mxu3 %vm3110_vm13, %v1337_v7  ;;  %2163 = vpow2.f32 %v1182_v60  ;;  %vm1299_vm13 = vmand %vm1295_vm6, %vm1297_vm14  ;;  %v1709_v58 = vperm.slane %v2834_v45, 3  ;;  %v1721_v22 = vperm.slane %v2834_v45, 4  ;;  %v1708_v60 = vperm.slane %v2850_v55, 3 }
 0x254   : > { %v1307_v25 = vsel %vm1299_vm13, %v1289_v61, 0.0 }
 0x255   : > { %v1319_v34 = vperm.slane %v1307_v25, 1 }
 0x258   : > { %2028 = vmatmul.msk.bf16.gmra.mxu0 %vm3111_vm2, %v1609_v11  ;;  %v2162_v47 = vpop.eup %2161  ;;  %vm2852_vm2 = vmand %vm1301_vm4, %vm1303_vm3 }
 0x259   : > { %v2845_v48 = vadd.f32 1.0, %v2162_v47  ;;  %v2164_v17 = vpop.eup %2163  ;;  %v1309_v10 = vsel %vm2852_vm2, %v1287_v44, 0.0 }
 0x25a   : > { %v2873_v6 = vadd.f32 1.0, %v2164_v17  ;;  %v1331_v41 = vperm.slane %v1309_v10, 1 }
 0x25b   : > { %2165 = vrcp.f32 %v2845_v48  ;;  %vm1208_vm14 = vweird.f32 %v2845_v48 }
 0x25c   : > { %2167 = vrcp.f32 %v2873_v6 }
 0x25e   : > { %2033 = vmatmul.msk.bf16.gmra.mxu1 %vm3112_vm5, %v1610_v12  ;;  %2008 = vmatmul.msk.bf16.gmra.mxu2 %vm3113_vm15, %v1337_v7  ;;  %vm1300_vm5 = vcmp.ge.s32.totalorder %v1292_v51, 0  ;;  %vm1302_vm15 = vcmp.le.s32.totalorder %v1292_v51, 7  ;;  %v1322_v7 = vperm.slane %v1292_v51, 1  ;;  %v1745_v51 = vperm.slane %v2834_v45, 7 }
 0x25f   : > { %vm2877_vm1 = vmand %vm1300_vm5, %vm1302_vm15  ;;  %vm1193_vm5 = vweird.f32 %v2873_v6 }
 0x260   : > { %v1308_v15 = vsel %vm2877_vm1, %v1286_v59, 0.0  ;;  %vm1324_vm6 = vcmp.eq.s32.totalorder %v2360_v36, %v1322_v7  ;;  %v1726_v59 = vperm.slane %v2850_v55, 5 }
 0x261   : > { %v2884_v19 = vpop.eup %2165  ;;  %v1330_v37 = vperm.slane %v1308_v15, 1 }
 0x262   : > { %v2926_v9 = vmul.f32 %v2884_v19, %v2845_v48  ;;  %vm1209_vm4 = vweird.f32 %v2884_v19 }
 0x263   : > { %vm2978_vm3 = vmor %vm1208_vm14, %vm1209_vm4 }
 0x268   : > { %2029 = vmatmul.msk.bf16.gmra.mxu0 %vm3114_vm8, %v1610_v12  ;;  %vm2863_vm8 = vcmp.eq.s32.totalorder %v2360_v36, %v1311_v54  ;;  %v2005_v54 = vsel %vm1324_vm6, 1.0, %v2236_v46 }
 0x269   : > { %v2004_v16 = vsel %vm2863_vm8, 1.0, %v2236_v46 }
 0x26a   : > { %v1321_v52 = vmul.f32 %v2004_v16, %v1319_v34  ;;  %v1738_v16 = vperm.slane %v2850_v55, 6 }
 0x26e   : > { %2034 = vmatmul.msk.bf16.gmra.mxu1 %vm3115_vm11, %v1611_v32  ;;  %vm2868_vm11 = vcmp.eq.s32.totalorder %v2360_v36, %v1323_v31  ;;  %v2003_v36 = vsel %vm2905_vm0, 1.0, %v2236_v46 }
 0x26f   : > { %v2006_v35 = vsel %vm2868_vm11, 1.0, %v2236_v46 }
 0x278   : > { %2030 = vmatmul.msk.bf16.gmra.mxu0 %vm3116_vm9, %v1611_v32  ;;  %vm1294_vm9 = vcmp.ge.s32.totalorder %v2840_v43, 0  ;;  %v1727_v32 = vperm.slane %v2834_v45, 5 }
 0x279   : > { %vm1298_vm7 = vmand %vm1294_vm9, %vm1296_vm10 }
 0x27a   : > { %v1306_v44 = vsel %vm1298_vm7, %v1288_v23, 0.0 }
 0x2bb   : > { %v1664_v33 = vpop.f32.mrf.mxu1 }
 0x2bc   : > { %v1693_v18 = vmul.f32 %v1691_v8, %v1664_v33  ;;  %v1687_v27 = vmul.f32 %v1685_v56, %v1664_v33  ;;  %v1702_v33 = vperm.slane %v2850_v55, 2  ;;  %v2913_v56 = vpop.eup %2167 }
 0x2bd   : > { %v2930_v7 = vmul.f32 %v2913_v56, %v2873_v6  ;;  %vm1194_vm2 = vweird.f32 %v2913_v56 }
 0x2be   : > { %v1697_v49 = vrot.slane %v1693_v18, 4  ;;  %v1739_v18 = vperm.slane %v2834_v45, 6  ;;  %v1720_v45 = vperm.slane %v2850_v55, 4  ;;  %vm2998_vm15 = vmor %vm1193_vm5, %vm1194_vm2 }
 0x2bf   : > { %v1190_v26 = vsub.f32 1.0, %v2930_v7 }
 0x2c0   : > { %v1701_v11 = vadd.f32 %v1697_v49, %v1687_v27  ;;  %v1332_v27 = vmul.f32 %v2005_v54, %v1330_v37 }
 0x2c3   : > { %v1666_v53 = vpop.f32.mrf.mxu1 }
 0x2c4   : > { %v1705_v63 = vmul.f32 %v1703_v57, %v1666_v53  ;;  %v1711_v3 = vmul.f32 %v1709_v58, %v1666_v53  ;;  %v1333_v53 = vmul.f32 %v2006_v35, %v1331_v41  ;;  %v1744_v41 = vperm.slane %v2850_v55, 7 }
 0x2c5   : > { %v1635_v40 = vpop.f32.mrf.mxu0 }
 0x2c6   : > { %v1692_v14 = vmul.f32 %v1690_v4, %v1635_v40  ;;  %v1707_v12 = vadd.f32 %v1705_v63, %v1701_v11  ;;  %v1715_v24 = vrot.slane %v1711_v3, 4  ;;  %v2899_v5 = vpop.f32.mrf.mxu3  ;;  %v1686_v43 = vmul.f32 %v1684_v28, %v1635_v40 }
 0x2c7   : > { %v1318_v40 = vperm.slane %v1306_v44, 1  ;;  %v2920_v3 = vadd.f32 %v1333_v53, %v1321_v52 }
 0x2c8   : > { %v1696_v30 = vrot.slane %v1692_v14, 4  ;;  %v1719_v47 = vadd.f32 %v1715_v24, %v1707_v12  ;;  %v1763_v12 = vperm.slane %v2675_v39, 1 }
 0x2c9   : > { %v1320_v1 = vmul.f32 %v2003_v36, %v1318_v40  ;;  %v1398_v24 = vperm.slane %v2920_v3, 1  ;;  %v1775_v36 = vperm.slane %v2675_v39, 2  ;;  %v1781_v40 = vperm.slane %v2675_v39, 3 }
 0x2ca   : > { %v1700_v31 = vadd.f32 %v1696_v30, %v1686_v43 }
 0x2cb   : > { %v1669_v21 = vpop.f32.mrf.mxu1  ;;  %v2932_v14 = vadd.f32 %v1332_v27, %v1320_v1 }
 0x2cc   : > { %v1723_v29 = vmul.f32 %v1721_v22, %v1669_v21  ;;  %v1729_v13 = vmul.f32 %v1727_v32, %v1669_v21  ;;  %v1757_v21 = vperm.slane %v2675_v39, 0 }
 0x2cd   : > { %v1637_v42 = vpop.f32.mrf.mxu0  ;;  %v1391_v37 = vperm.slane %v2932_v14, 0  ;;  %v1397_v55 = vperm.slane %v2932_v14, 1  ;;  %v1415_v54 = vperm.slane %v2932_v14, 3  ;;  %v1433_v1 = vperm.slane %v2932_v14, 5 }
 0x2ce   : > { %v1704_v2 = vmul.f32 %v1702_v33, %v1637_v42  ;;  %v1710_v8 = vmul.f32 %v1708_v60, %v1637_v42  ;;  %v1725_v20 = vadd.f32 %v1723_v29, %v1719_v47  ;;  %v1733_v61 = vrot.slane %v1729_v13, 4  ;;  %v1383_v46 = vpop.f32.mrf.mxu3 }
 0x2cf   : > { %v1205_v29 = vsub.f32 1.0, %v2926_v9  ;;  %v1400_v13 = vmul.f32 %v1398_v24, %v2899_v5  ;;  %v1392_v47 = vperm.slane %v2920_v3, 0 }
 0x2d0   : > { %v1706_v58 = vadd.f32 %v1704_v2, %v1700_v31  ;;  %v1714_v17 = vrot.slane %v1710_v8, 4  ;;  %v1737_v63 = vadd.f32 %v1733_v61, %v1725_v20  ;;  %v1410_v2 = vperm.slane %v2920_v3, 2 }
 0x2d1   : > { %v2922_v4 = vpop.f32.mrf.mxu2  ;;  %v1416_v8 = vperm.slane %v2920_v3, 3  ;;  %v1409_v20 = vperm.slane %v2932_v14, 2  ;;  %v1404_v61 = vrot.slane %v1400_v13, 4  ;;  %v1445_v13 = vperm.slane %v2932_v14, 6 }
 0x2d2   : > { %v1718_v62 = vadd.f32 %v1714_v17, %v1706_v58  ;;  %v1434_v17 = vperm.slane %v2920_v3, 5 }
 0x2d3   : > { %v1671_v38 = vpop.f32.mrf.mxu1  ;;  %v1418_v58 = vmul.f32 %v1416_v8, %v1383_v46  ;;  %v1393_v8 = vmul.f32 %v1391_v37, %v2922_v4 }
 0x2d4   : > { %v1741_v49 = vmul.f32 %v1739_v18, %v1671_v38  ;;  %v1747_v57 = vmul.f32 %v1745_v51, %v1671_v38  ;;  %v1428_v38 = vperm.slane %v2920_v3, 4 }
 0x2d5   : > { %v1640_v25 = vpop.f32.mrf.mxu0 }
 0x2d6   : > { %v1722_v10 = vmul.f32 %v1720_v45, %v1640_v25  ;;  %v1728_v0 = vmul.f32 %v1726_v59, %v1640_v25  ;;  %v1743_v11 = vadd.f32 %v1741_v49, %v1737_v63  ;;  %v1751_v23 = vrot.slane %v1747_v57, 4  ;;  %v1386_v31 = vpop.f32.mrf.mxu3 }
 0x2d7   : > { %v1394_v49 = vmul.f32 %v1392_v47, %v2899_v5  ;;  %v1412_v57 = vmul.f32 %v1410_v2, %v1383_v46  ;;  %v1756_v45 = vperm.slane %v2757_v50, 0  ;;  %v1762_v59 = vperm.slane %v2757_v50, 1 }
 0x2d8   : > { %v1724_v22 = vadd.f32 %v1722_v10, %v1718_v62  ;;  %v1732_v32 = vrot.slane %v1728_v0, 4  ;;  %v1755_v35 = vadd.f32 %v1751_v23, %v1743_v11  ;;  %v1427_v0 = vperm.slane %v2932_v14, 4 }
 0x2d9   : > { %v1364_v53 = vpop.f32.mrf.mxu2  ;;  %v1408_v10 = vadd.f32 %v1404_v61, %v1394_v49  ;;  %v1206_v2 = vmul.f32 %v2884_v19, %v1205_v29 }
 0x2da   : > { %v1736_v43 = vadd.f32 %v1732_v32, %v1724_v22  ;;  %v1422_v22 = vrot.slane %v1418_v58, 4  ;;  %v1446_v32 = vperm.slane %v2920_v3, 6 }
 0x2db   : > { %v1674_v34 = vpop.f32.mrf.mxu1  ;;  %v1414_v24 = vadd.f32 %v1412_v57, %v1408_v10  ;;  %v1207_v29 = vadd.f32 %v2884_v19, %v1206_v2 }
 0x2dc   : > { %v1759_v42 = vmul.f32 %v1757_v21, %v1674_v34  ;;  %v1765_v15 = vmul.f32 %v1763_v12, %v1674_v34  ;;  %v1399_v12 = vmul.f32 %v1397_v55, %v2922_v4 }
 0x2dd   : > { %v1642_v28 = vpop.f32.mrf.mxu0 }
 0x2de   : > { %v1740_v30 = vmul.f32 %v1738_v16, %v1642_v28  ;;  %v1746_v33 = vmul.f32 %v1744_v41, %v1642_v28  ;;  %v1761_v60 = vadd.f32 %v1759_v42, %v1755_v35  ;;  %v1769_v44 = vrot.slane %v1765_v15, 4 }
 0x2df   : > { %v1452_v16 = vperm.slane %v2920_v3, 7  ;;  %v1430_v42 = vmul.f32 %v1428_v38, %v1386_v31  ;;  %v1436_v15 = vmul.f32 %v1434_v17, %v1386_v31  ;;  %v1774_v28 = vperm.slane %v2757_v50, 2 }
 0x2e0   : > { %v1742_v18 = vadd.f32 %v1740_v30, %v1736_v43  ;;  %v1750_v51 = vrot.slane %v1746_v33, 4  ;;  %v1773_v52 = vadd.f32 %v1769_v44, %v1761_v60  ;;  %v1780_v33 = vperm.slane %v2757_v50, 3 }
 0x2e1   : > { %v1793_v60 = vperm.slane %v2675_v39, 4  ;;  %v1799_v44 = vperm.slane %v2675_v39, 5  ;;  %v1403_v47 = vrot.slane %v1399_v12, 4  ;;  %v1426_v43 = vadd.f32 %v1422_v22, %v1414_v24  ;;  %v1367_v61 = vpop.f32.mrf.mxu2 }
 0x2e2   : > { %v1754_v11 = vadd.f32 %v1750_v51, %v1742_v18  ;;  %v1792_v3 = vperm.slane %v2757_v50, 4  ;;  %v1388_v18 = vpop.f32.mrf.mxu3  ;;  %v1411_v31 = vmul.f32 %v1409_v20, %v1364_v53  ;;  %v1417_v38 = vmul.f32 %v1415_v54, %v1364_v53 }
 0x2e3   : > { %v1676_v25 = vpop.f32.mrf.mxu1  ;;  %v1407_v9 = vadd.f32 %v1403_v47, %v1393_v8  ;;  %v1454_v4 = vmul.f32 %v1452_v16, %v1388_v18  ;;  %v1212_v53 = vand.u32 2147483647, %v2845_v48  ;;  %v1214_v54 = vand.u32 2147483648, %v2845_v48 }
 0x2e4   : > { %v1777_v27 = vmul.f32 %v1775_v36, %v1676_v25  ;;  %v1783_v63 = vmul.f32 %v1781_v40, %v1676_v25  ;;  %v1432_v36 = vadd.f32 %v1430_v42, %v1426_v43  ;;  %v1440_v40 = vrot.slane %v1436_v15, 4 }
 0x2e5   : > { %v1645_v23 = vpop.f32.mrf.mxu0  ;;  %v1421_v20 = vrot.slane %v1417_v38, 4  ;;  %v1798_v12 = vperm.slane %v2757_v50, 5  ;;  %v1211_v24 = vsel %vm2978_vm3, %v2884_v19, %v1207_v29  ;;  %v1458_v16 = vrot.slane %v1454_v4, 4 }
 0x2e6   : > { %v1758_v62 = vmul.f32 %v1756_v45, %v1645_v23  ;;  %v1764_v5 = vmul.f32 %v1762_v59, %v1645_v23  ;;  %v1779_v21 = vadd.f32 %v1777_v27, %v1773_v52  ;;  %v1787_v46 = vrot.slane %v1783_v63, 4 }
 0x2e7   : > { %v1448_v45 = vmul.f32 %v1446_v32, %v1388_v18  ;;  %v1413_v63 = vadd.f32 %v1411_v31, %v1407_v9  ;;  %v1444_v10 = vadd.f32 %v1440_v40, %v1432_v36  ;;  %vm1213_vm13 = vcmp.eq.f32.partialorder %v1212_v53, 8.507059e+37 }
 0x2e8   : > { %v1760_v34 = vadd.f32 %v1758_v62, %v1754_v11  ;;  %v1768_v35 = vrot.slane %v1764_v5, 4  ;;  %v1791_v41 = vadd.f32 %v1787_v46, %v1779_v21  ;;  %v1811_v62 = vperm.slane %v2675_v39, 6 }
 0x2e9   : > { %v1817_v5 = vperm.slane %v2675_v39, 7  ;;  %v1429_v21 = vmul.f32 %v1427_v0, %v1367_v61  ;;  %v1435_v46 = vmul.f32 %v1433_v1, %v1367_v61  ;;  %v1450_v32 = vadd.f32 %v1448_v45, %v1444_v10  ;;  %v1369_v0 = vpop.f32.mrf.mxu2 }
 0x2ea   : > { %v1772_v30 = vadd.f32 %v1768_v35, %v1760_v34  ;;  %v1425_v35 = vadd.f32 %v1421_v20, %v1413_v63  ;;  %v1215_v42 = vor.u32 1.1754944e-38, %v1214_v54  ;;  %v1191_v39 = vmul.f32 %v2913_v56, %v1190_v26 }
 0x2eb   : > { %v1679_v55 = vpop.f32.mrf.mxu1  ;;  %v1439_v19 = vrot.slane %v1435_v46, 4  ;;  %v1462_v47 = vadd.f32 %v1458_v16, %v1450_v32  ;;  %v1447_v8 = vmul.f32 %v1445_v13, %v1369_v0  ;;  %v1810_v13 = vperm.slane %v2757_v50, 6 }
 0x2ec   : > { %v1795_v51 = vmul.f32 %v1793_v60, %v1679_v55  ;;  %v1801_v52 = vmul.f32 %v1799_v44, %v1679_v55  ;;  %v1451_v60 = vperm.slane %v2932_v14, 7  ;;  %v1216_v44 = vsel %vm1213_vm13, %v1215_v42, %v1211_v24 }
 0x2ed   : > { %v1647_v49 = vpop.f32.mrf.mxu0  ;;  %v1192_v7 = vadd.f32 %v2913_v56, %v1191_v39  ;;  %v1831_v18 = vperm.slane %v1216_v44, 4  ;;  %v1197_v14 = vand.u32 2147483647, %v2873_v6  ;;  %v1816_v36 = vperm.slane %v2757_v50, 7 }
 0x2ee   : > { %v1776_v57 = vmul.f32 %v1774_v28, %v1647_v49  ;;  %v1782_v58 = vmul.f32 %v1780_v33, %v1647_v49  ;;  %v1797_v17 = vadd.f32 %v1795_v51, %v1791_v41  ;;  %v1805_v25 = vrot.slane %v1801_v52, 4 }
 0x2ef   : > { %v1431_v33 = vadd.f32 %v1429_v21, %v1425_v35  ;;  %v1453_v26 = vmul.f32 %v1451_v60, %v1369_v0  ;;  %v1199_v52 = vand.u32 2147483648, %v2873_v6  ;;  %v1196_v49 = vsel %vm2998_vm15, %v2913_v56, %v1192_v7 }
 0x2f0   : > { %v1778_v37 = vadd.f32 %v1776_v57, %v1772_v30  ;;  %v1786_v59 = vrot.slane %v1782_v58, 4  ;;  %v1809_v27 = vadd.f32 %v1805_v25, %v1797_v17  ;;  %vm1198_vm8 = vcmp.eq.f32.partialorder %v1197_v14, 8.507059e+37 }
 0x2f1   : > { %v1443_v51 = vadd.f32 %v1439_v19, %v1431_v33  ;;  %v1457_v58 = vrot.slane %v1453_v26, 4  ;;  %v1200_v45 = vor.u32 1.1754944e-38, %v1199_v52 }
 0x2f2   : > { %v1790_v11 = vadd.f32 %v1786_v59, %v1778_v37 }
 0x2f3   : > { %v1681_v22 = vpop.f32.mrf.mxu1  ;;  %v1449_v40 = vadd.f32 %v1447_v8, %v1443_v51  ;;  %v1201_v4 = vsel %vm1198_vm8, %v1200_v45, %v1196_v49 }
 0x2f4   : > { %v1813_v48 = vmul.f32 %v1811_v62, %v1681_v22  ;;  %v1819_v34 = vmul.f32 %v1817_v5, %v1681_v22  ;;  %v1830_v59 = vperm.slane %v1201_v4, 4 }
 0x2f5   : > { %v1650_v41 = vpop.f32.mrf.mxu0  ;;  %v1461_v37 = vadd.f32 %v1457_v58, %v1449_v40 }
 0x2f6   : > { %v1794_v1 = vmul.f32 %v1792_v3, %v1650_v41  ;;  %v1800_v15 = vmul.f32 %v1798_v12, %v1650_v41  ;;  %v1815_v28 = vadd.f32 %v1813_v48, %v1809_v27  ;;  %v1823_v30 = vrot.slane %v1819_v34, 4 }
 0x2f8   : > { %v1796_v43 = vadd.f32 %v1794_v1, %v1790_v11  ;;  %v1804_v55 = vrot.slane %v1800_v15, 4  ;;  %v1827_v2 = vadd.f32 %v1823_v30, %v1815_v28 }
 0x2fa   : > { %v1808_v3 = vadd.f32 %v1804_v55, %v1796_v43  ;;  %v1829_v61 = vsub.f32 %v1827_v2, %v1462_v47 }
 0x2fc   : > { %v1833_v31 = vmul.f32 %v1831_v18, %v1829_v61 }
 0x2fd   : > { %v1652_v57 = vpop.f32.mrf.mxu0 }
 0x2fe   : > { %v1835_v17 = vadd.f32 %v1833_v31, %v1462_v47  ;;  %v1812_v25 = vmul.f32 %v1810_v13, %v1652_v57  ;;  %v1818_v9 = vmul.f32 %v1816_v36, %v1652_v57 }
 0x300   : > { %v1814_v29 = vadd.f32 %v1812_v25, %v1808_v3  ;;  %v1822_v6 = vrot.slane %v1818_v9, 4  ;;  %v1838_v20 = vrot.slane %v1835_v17, 4 }
 0x302   : > { %v1826_v50 = vadd.f32 %v1822_v6, %v1814_v29 }
 0x304   : > { %v1828_v56 = vsub.f32 %v1826_v50, %v1461_v37 }
 0x306   : > { %v1832_v27 = vmul.f32 %v1830_v59, %v1828_v56 }
 0x308   : > { %v1834_v63 = vadd.f32 %v1832_v27, %v1461_v37 }
 0x30a   : > { %v1839_v53 = vsel %vm1346_vm12, %v1834_v63, %v1838_v20 }
 0x30b   : > { %1841 = vst [vmem:[%s220_s14] sm:$0xff] %v1839_v53 }
 0x30c   : > { %2198 = shalt.err (!%p2195_p3)
}
 0x30d   : > { %2070 = dma.vmem_to_hbm [thread:$0]  (%p2308_p5), %s1857_s20, 128, %s1859_s22, %s1843_s19  }
 0x30e PF: > { %p2076_p4 = scmp.ge.s32.totalorder %s2233_s18, 2  ;;  %s1870_s7 = sand.u32 1, %s2221_s15  }
 0x30f   : > { %s1871_s9 = scalar_lea.sflag [#allocation4], %s1870_s7 }
 0x310   : > { %p2073_p7 = pnand %p2076_p4, %p2312_p6 }
 0x312   : > { %p2074_p8 = pneg %p2073_p7 }
 0x314   : > { %2216 = dma.done.wait (%p2074_p8), %s1871_s9, 128  }
 0x315   : > { %2218 = vsyncadd (%p2074_p8), %s1871_s9, 4294967168  ;;  %p14_p9 = scmp.ge.s32.totalorder %s2295_s21, 4   ;;  %s3131_s15 = smov %s2225_s16 }
 0x316   : > { %s3132_s16 = smov %s2229_s17  ;;  %s3133_s17 = smov %s2306_s24 }
 0x317   : > { %s3134_s18 = smov %s2295_s21  ;;  %16 = sbr.rel (!%p14_p9) target bundleno = 3 (0x3), region = 86 }
 0x31c   :  { %1877 = vsyncpa [#allocation4], 1 }
 0x31d   :  { %1879 = vsyncpa [#allocation4 + $0x1], 1 }

</bundles_post_ra>
